<compile_context>
chip_gen: v6e
topology: v6e:2x2x1
jax: 0.10.0
libtpu: 0.0.40
codegen_flags: <defaults>
</compile_context>

<pallas_src>
import jax
import jax.numpy as jnp
from jax.experimental import pallas as pl
from jax.experimental.pallas import tpu as pltpu


def _critic_kernel(x_ref, w1a_ref, w1p_ref, w1n_ref, b1_ref, w2_ref, b2_ref,
                   w3_ref, out_ref):
    """One block of TB problems.

    x_ref   : (P, 3, TB) bf16  -- slab p = node p; rows = [cx, cy, extra]; lanes = problems
    w1a/w1p/w1n : (E, 3) bf16  -- layer-1 weight columns for cur / prev / next node
    b1, b2  : (E, 1) f32       -- column biases (broadcast over lanes)
    w2      : (E, E) bf16
    w3      : (1, E) f32       -- final head, already scaled by 1/P
    out     : (1, TB) f32      -- per-problem mean q (scalar bias b3 added on host)
    """
    P = x_ref.shape[0]
    E = w2_ref.shape[0]
    TB = x_ref.shape[2]

    w1a = w1a_ref[...]
    w1p = w1p_ref[...]
    w1n = w1n_ref[...]
    b1 = b1_ref[...]
    w2 = w2_ref[...]
    b2 = b2_ref[...]

    acc = jnp.zeros((E, TB), jnp.float32)
    # Static unrolled loop over nodes (P is small; for very large problem_dim a
    # lax.fori_loop with dynamic slab indexing would bound live ranges instead).
    for p in range(P):
        cur = x_ref[p]                    # (3, TB) bf16, lane-dense slab read
        prv = x_ref[(p - 1) % P]          # == torch.roll(coords, +1, node axis)
        nxt = x_ref[(p + 1) % P]          # == torch.roll(coords, -1, node axis)

        # Layer 1: split by feature source -> no sublane concat, no shuffles.
        h = (jnp.dot(w1a, cur, preferred_element_type=jnp.float32)
             + jnp.dot(w1p, prv, preferred_element_type=jnp.float32)
             + jnp.dot(w1n, nxt, preferred_element_type=jnp.float32))
        h = jnp.maximum(h + b1, 0.0)                              # (E, TB) f32

        # Layer 2: (E,E) @ (E,TB) -- TB on the MXU N/lane side.
        g = jnp.dot(w2, h.astype(jnp.bfloat16),
                    preferred_element_type=jnp.float32)
        g = jnp.maximum(g + b2, 0.0)                              # (E, TB) f32

        acc = acc + g                                             # node-sum

    # mean over nodes + final linear head: (1/P) is folded into w3 on the host.
    out_ref[...] = jnp.dot(w3_ref[...], acc,
                           preferred_element_type=jnp.float32)    # (1, TB)


def cvrp_critic_forward(state, params):
    """JAX re-implementation of CVRPCritic.forward.

    state: (n_problems, problem_dim, 4) float32 -> (n_problems,) float32.
    params are stored in torch layout: w1 (E,7), b1 (E,), w2 (E,E), b2 (E,),
    w3 (1,E), b3 (1,).
    """
    B, P, D = state.shape
    assert D == 4, "this instantiation assumes dim=4 -> c=7 MLP input"
    w1, b1, w2, b2, w3, b3 = params
    E = w2.shape[0]

    # --- glue: split + data-dependent gather (stays in JAX) ----------------
    idx = state[..., 0:1].astype(jnp.int32)                       # (B, P, 1)
    coords = state[..., 1:3].astype(jnp.float32)                  # (B, P, 2)
    extra = state[..., 3:4].astype(jnp.float32)                   # (B, P, 1)
    coords = jnp.take_along_axis(coords, jnp.broadcast_to(idx, coords.shape),
                                 axis=1)

    # Channel-major, problem-minor layout: (P, 3, B) bf16 (lane-dense DMA).
    x = jnp.concatenate([coords, extra], axis=-1)                  # (B, P, 3)
    x_cm = jnp.transpose(x, (1, 2, 0)).astype(jnp.bfloat16)        # (P, 3, B)

    # --- kernel-side weight prep (bf16 MXU operands, f32 epilogue) ---------
    # Feature order of w1 columns: [cx, cy, px, py, nx, ny, extra].
    zero_col = jnp.zeros((E,), w1.dtype)
    w1a = jnp.stack([w1[:, 0], w1[:, 1], w1[:, 6]], axis=1).astype(jnp.bfloat16)
    w1p = jnp.stack([w1[:, 2], w1[:, 3], zero_col], axis=1).astype(jnp.bfloat16)
    w1n = jnp.stack([w1[:, 4], w1[:, 5], zero_col], axis=1).astype(jnp.bfloat16)
    w2b = w2.astype(jnp.bfloat16)
    b1c = b1.reshape(E, 1).astype(jnp.float32)
    b2c = b2.reshape(E, 1).astype(jnp.float32)
    w3s = (w3.reshape(1, E) / float(P)).astype(jnp.float32)        # fold 1/P

    # --- tile selection: ~32K nodes per grid step, lane-aligned blocks -----
    LANE = 128
    TARGET_NODES = 32768
    if B <= 2 * LANE:
        tb = B                                    # full-extent block (tiny B)
    else:
        tb = min(max(TARGET_NODES // P, LANE), B // 2)   # >=2 steps (v7x megacore)
        tb = max(LANE, (tb // LANE) * LANE)               # 128-aligned lanes
    grid_n = pl.cdiv(B, tb)
    b_pad = grid_n * tb
    if b_pad != B:
        x_cm = jnp.pad(x_cm, ((0, 0), (0, 0), (0, b_pad - B)))

    out = pl.pallas_call(
        _critic_kernel,
        out_shape=jax.ShapeDtypeStruct((1, b_pad), jnp.float32),
        grid=(grid_n,),
        in_specs=[
            pl.BlockSpec((P, 3, tb), lambda i: (0, 0, i)),         # node data
            pl.BlockSpec((E, 3), lambda i: (0, 0)),                # w1a (resident)
            pl.BlockSpec((E, 3), lambda i: (0, 0)),                # w1p
            pl.BlockSpec((E, 3), lambda i: (0, 0)),                # w1n
            pl.BlockSpec((E, 1), lambda i: (0, 0)),                # b1
            pl.BlockSpec((E, E), lambda i: (0, 0)),                # w2
            pl.BlockSpec((E, 1), lambda i: (0, 0)),                # b2
            pl.BlockSpec((1, E), lambda i: (0, 0)),                # w3 / P
        ],
        out_specs=pl.BlockSpec((1, tb), lambda i: (0, i)),         # lane-dense out
        compiler_params=pltpu.CompilerParams(
            dimension_semantics=("parallel",)),
    )(x_cm, w1a, w1p, w1n, b1c, w2b, b2c, w3s)

    return out[0, :B] + b3[0]                                      # (B,)


def init_params(key, c=7, embed_dim=32):
    """Mirrors the module's kaiming_uniform_ + bias=0.01 init (torch (out,in) layout)."""
    k1, k2, k3 = jax.random.split(key, 3)

    def kaiming_uniform(k, fan_out, fan_in):
        bound = float(jnp.sqrt(6.0 / fan_in))    # torch kaiming_uniform_, fan_in mode
        return jax.random.uniform(k, (fan_out, fan_in), jnp.float32, -bound, bound)

    w1 = kaiming_uniform(k1, embed_dim, c)                        # (E, 7)
    b1 = jnp.full((embed_dim,), 0.01, jnp.float32)
    w2 = kaiming_uniform(k2, embed_dim, embed_dim)                # (E, E)
    b2 = jnp.full((embed_dim,), 0.01, jnp.float32)
    w3 = kaiming_uniform(k3, 1, embed_dim)                        # (1, E)
    b3 = jnp.full((1,), 0.01, jnp.float32)
    return (w1, b1, w2, b2, w3, b3)


def reference_forward(state, params):
    """Pure-JAX f32 reference of CVRPCritic.forward (for sanity checking)."""
    w1, b1, w2, b2, w3, b3 = params
    idx = state[..., 0:1].astype(jnp.int32)
    coords = state[..., 1:3]
    extra = state[..., 3:4]
    coords = jnp.take_along_axis(coords, jnp.broadcast_to(idx, coords.shape), axis=1)
    feat = jnp.concatenate([coords, jnp.roll(coords, 1, axis=1),
                            jnp.roll(coords, -1, axis=1), extra], axis=-1)  # (B,P,7)
    h = jax.nn.relu(feat @ w1.T + b1)
    h = jax.nn.relu(h @ w2.T + b2)
    q = (h @ w3.T)[..., 0] + b3[0]                                 # (B, P)
    return q.mean(axis=-1)


if __name__ == "__main__":
    key = jax.random.PRNGKey(0)
    k_idx, k_coord, k_extra, k_param = jax.random.split(key, 4)

    n_problems, problem_dim, embed_dim = 2, 8, 32

    # state layout: [node_index, coord_x, coord_y, extra_feature]
    idx_col = jax.random.randint(k_idx, (n_problems, problem_dim, 1),
                                 0, problem_dim).astype(jnp.float32)
    coords = jax.random.uniform(k_coord, (n_problems, problem_dim, 2),
                                dtype=jnp.float32)
    extra = jax.random.uniform(k_extra, (n_problems, problem_dim, 1),
                               dtype=jnp.float32)
    state = jnp.concatenate([idx_col, coords, extra], axis=-1)     # (2, 8, 4)

    params = init_params(k_param, c=7, embed_dim=embed_dim)

    forward = jax.jit(cvrp_critic_forward)
    out = forward(state, params)                                   # (2,)
    jax.block_until_ready(out)
    assert out.shape == (n_problems,)

    ref = reference_forward(state, params)
    max_diff = float(jnp.max(jnp.abs(out - ref)))
    assert max_diff < 5e-2, f"mismatch vs reference: {max_diff}"

    print("KERNEL_OK")
</pallas_src>

<mosaic_0001>
module attributes {stable_mosaic.version = 11 : i64} {
  func.func @_critic_kernel(%arg0: i32, %arg1: memref<8x3x2xbf16, #tpu.memory_space<vmem>>, %arg2: memref<32x3xbf16, #tpu.memory_space<vmem>>, %arg3: memref<32x3xbf16, #tpu.memory_space<vmem>>, %arg4: memref<32x3xbf16, #tpu.memory_space<vmem>>, %arg5: memref<32x1xf32, #tpu.memory_space<vmem>>, %arg6: memref<32x32xbf16, #tpu.memory_space<vmem>>, %arg7: memref<32x1xf32, #tpu.memory_space<vmem>>, %arg8: memref<1x32xf32, #tpu.memory_space<vmem>>, %arg9: memref<1x2xf32, #tpu.memory_space<vmem>>) attributes {dimension_semantics = [#tpu.dimension_semantics<parallel>], iteration_bounds = array<i64: 1>, scalar_prefetch = 0 : i64, scratch_operands = 0 : i64, tpu.core_type = #tpu.core_type<tc>, window_params = [{transform_indices = @transform_0, window_bounds = array<i64: 8, 3, 2>}, {pipeline_mode = #tpu.pipeline_mode<synchronous>, transform_indices = @transform_1, window_bounds = array<i64: 32, 3>}, {pipeline_mode = #tpu.pipeline_mode<synchronous>, transform_indices = @transform_2, window_bounds = array<i64: 32, 3>}, {pipeline_mode = #tpu.pipeline_mode<synchronous>, transform_indices = @transform_3, window_bounds = array<i64: 32, 3>}, {pipeline_mode = #tpu.pipeline_mode<synchronous>, transform_indices = @transform_4, window_bounds = array<i64: 32, 1>}, {pipeline_mode = #tpu.pipeline_mode<synchronous>, transform_indices = @transform_5, window_bounds = array<i64: 32, 32>}, {pipeline_mode = #tpu.pipeline_mode<synchronous>, transform_indices = @transform_6, window_bounds = array<i64: 32, 1>}, {pipeline_mode = #tpu.pipeline_mode<synchronous>, transform_indices = @transform_7, window_bounds = array<i64: 1, 32>}, {transform_indices = @transform_8, window_bounds = array<i64: 1, 2>}]} {
    %c0 = arith.constant 0 : index
    %c0_0 = arith.constant 0 : index
    %0 = vector.load %arg2[%c0, %c0_0] : memref<32x3xbf16, #tpu.memory_space<vmem>>, vector<32x3xbf16>
    %c0_1 = arith.constant 0 : index
    %c0_2 = arith.constant 0 : index
    %1 = vector.load %arg3[%c0_1, %c0_2] : memref<32x3xbf16, #tpu.memory_space<vmem>>, vector<32x3xbf16>
    %c0_3 = arith.constant 0 : index
    %c0_4 = arith.constant 0 : index
    %2 = vector.load %arg4[%c0_3, %c0_4] : memref<32x3xbf16, #tpu.memory_space<vmem>>, vector<32x3xbf16>
    %c0_5 = arith.constant 0 : index
    %c0_6 = arith.constant 0 : index
    %3 = vector.load %arg5[%c0_5, %c0_6] : memref<32x1xf32, #tpu.memory_space<vmem>>, vector<32x1xf32>
    %c0_7 = arith.constant 0 : index
    %c0_8 = arith.constant 0 : index
    %4 = vector.load %arg6[%c0_7, %c0_8] : memref<32x32xbf16, #tpu.memory_space<vmem>>, vector<32x32xbf16>
    %c0_9 = arith.constant 0 : index
    %c0_10 = arith.constant 0 : index
    %5 = vector.load %arg7[%c0_9, %c0_10] : memref<32x1xf32, #tpu.memory_space<vmem>>, vector<32x1xf32>
    %cst = arith.constant 0.000000e+00 : f32
    %6 = vector.broadcast %cst : f32 to vector<32x2xf32>
    %c0_11 = arith.constant 0 : index
    %c0_12 = arith.constant 0 : index
    %c0_13 = arith.constant 0 : index
    %7 = vector.load %arg1[%c0_11, %c0_12, %c0_13] : memref<8x3x2xbf16, #tpu.memory_space<vmem>>, vector<1x3x2xbf16>
    %8 = vector.shape_cast %7 : vector<1x3x2xbf16> to vector<3x2xbf16>
    %c7 = arith.constant 7 : index
    %c0_14 = arith.constant 0 : index
    %c0_15 = arith.constant 0 : index
    %9 = vector.load %arg1[%c7, %c0_14, %c0_15] : memref<8x3x2xbf16, #tpu.memory_space<vmem>>, vector<1x3x2xbf16>
    %10 = vector.shape_cast %9 : vector<1x3x2xbf16> to vector<3x2xbf16>
    %c1 = arith.constant 1 : index
    %c0_16 = arith.constant 0 : index
    %c0_17 = arith.constant 0 : index
    %11 = vector.load %arg1[%c1, %c0_16, %c0_17] : memref<8x3x2xbf16, #tpu.memory_space<vmem>>, vector<1x3x2xbf16>
    %12 = vector.shape_cast %11 : vector<1x3x2xbf16> to vector<3x2xbf16>
    %cst_18 = arith.constant dense<0.000000e+00> : vector<32x2xf32>
    %13 = tpu.matmul %0, %8, %cst_18 {dimension_numbers = #tpu.dot_dimension_numbers<[1], [0], [0], [1], [0, 0, 1, 1], [], []>} : vector<32x3xbf16>, vector<3x2xbf16>, vector<32x2xf32> -> vector<32x2xf32>
    %cst_19 = arith.constant dense<0.000000e+00> : vector<32x2xf32>
    %14 = tpu.matmul %1, %10, %cst_19 {dimension_numbers = #tpu.dot_dimension_numbers<[1], [0], [0], [1], [0, 0, 1, 1], [], []>} : vector<32x3xbf16>, vector<3x2xbf16>, vector<32x2xf32> -> vector<32x2xf32>
    %15 = arith.addf %13, %14 : vector<32x2xf32>
    %cst_20 = arith.constant dense<0.000000e+00> : vector<32x2xf32>
    %16 = tpu.matmul %2, %12, %cst_20 {dimension_numbers = #tpu.dot_dimension_numbers<[1], [0], [0], [1], [0, 0, 1, 1], [], []>} : vector<32x3xbf16>, vector<3x2xbf16>, vector<32x2xf32> -> vector<32x2xf32>
    %17 = arith.addf %15, %16 : vector<32x2xf32>
    %18 = vector.broadcast %3 : vector<32x1xf32> to vector<32x2xf32>
    %19 = arith.addf %17, %18 : vector<32x2xf32>
    %cst_21 = arith.constant 0.000000e+00 : f32
    %20 = vector.broadcast %cst_21 : f32 to vector<32x2xf32>
    %21 = arith.maximumf %19, %20 : vector<32x2xf32>
    %22 = arith.truncf %21 : vector<32x2xf32> to vector<32x2xbf16>
    %cst_22 = arith.constant dense<0.000000e+00> : vector<32x2xf32>
    %23 = tpu.matmul %4, %22, %cst_22 {dimension_numbers = #tpu.dot_dimension_numbers<[1], [0], [0], [1], [0, 0, 1, 1], [], []>} : vector<32x32xbf16>, vector<32x2xbf16>, vector<32x2xf32> -> vector<32x2xf32>
    %24 = vector.broadcast %5 : vector<32x1xf32> to vector<32x2xf32>
    %25 = arith.addf %23, %24 : vector<32x2xf32>
    %cst_23 = arith.constant 0.000000e+00 : f32
    %26 = vector.broadcast %cst_23 : f32 to vector<32x2xf32>
    %27 = arith.maximumf %25, %26 : vector<32x2xf32>
    %28 = arith.addf %6, %27 : vector<32x2xf32>
    %c1_24 = arith.constant 1 : index
    %c0_25 = arith.constant 0 : index
    %c0_26 = arith.constant 0 : index
    %29 = vector.load %arg1[%c1_24, %c0_25, %c0_26] : memref<8x3x2xbf16, #tpu.memory_space<vmem>>, vector<1x3x2xbf16>
    %30 = vector.shape_cast %29 : vector<1x3x2xbf16> to vector<3x2xbf16>
    %c0_27 = arith.constant 0 : index
    %c0_28 = arith.constant 0 : index
    %c0_29 = arith.constant 0 : index
    %31 = vector.load %arg1[%c0_27, %c0_28, %c0_29] : memref<8x3x2xbf16, #tpu.memory_space<vmem>>, vector<1x3x2xbf16>
    %32 = vector.shape_cast %31 : vector<1x3x2xbf16> to vector<3x2xbf16>
    %c2 = arith.constant 2 : index
    %c0_30 = arith.constant 0 : index
    %c0_31 = arith.constant 0 : index
    %33 = vector.load %arg1[%c2, %c0_30, %c0_31] : memref<8x3x2xbf16, #tpu.memory_space<vmem>>, vector<1x3x2xbf16>
    %34 = vector.shape_cast %33 : vector<1x3x2xbf16> to vector<3x2xbf16>
    %cst_32 = arith.constant dense<0.000000e+00> : vector<32x2xf32>
    %35 = tpu.matmul %0, %30, %cst_32 {dimension_numbers = #tpu.dot_dimension_numbers<[1], [0], [0], [1], [0, 0, 1, 1], [], []>} : vector<32x3xbf16>, vector<3x2xbf16>, vector<32x2xf32> -> vector<32x2xf32>
    %cst_33 = arith.constant dense<0.000000e+00> : vector<32x2xf32>
    %36 = tpu.matmul %1, %32, %cst_33 {dimension_numbers = #tpu.dot_dimension_numbers<[1], [0], [0], [1], [0, 0, 1, 1], [], []>} : vector<32x3xbf16>, vector<3x2xbf16>, vector<32x2xf32> -> vector<32x2xf32>
    %37 = arith.addf %35, %36 : vector<32x2xf32>
    %cst_34 = arith.constant dense<0.000000e+00> : vector<32x2xf32>
    %38 = tpu.matmul %2, %34, %cst_34 {dimension_numbers = #tpu.dot_dimension_numbers<[1], [0], [0], [1], [0, 0, 1, 1], [], []>} : vector<32x3xbf16>, vector<3x2xbf16>, vector<32x2xf32> -> vector<32x2xf32>
    %39 = arith.addf %37, %38 : vector<32x2xf32>
    %40 = vector.broadcast %3 : vector<32x1xf32> to vector<32x2xf32>
    %41 = arith.addf %39, %40 : vector<32x2xf32>
    %cst_35 = arith.constant 0.000000e+00 : f32
    %42 = vector.broadcast %cst_35 : f32 to vector<32x2xf32>
    %43 = arith.maximumf %41, %42 : vector<32x2xf32>
    %44 = arith.truncf %43 : vector<32x2xf32> to vector<32x2xbf16>
    %cst_36 = arith.constant dense<0.000000e+00> : vector<32x2xf32>
    %45 = tpu.matmul %4, %44, %cst_36 {dimension_numbers = #tpu.dot_dimension_numbers<[1], [0], [0], [1], [0, 0, 1, 1], [], []>} : vector<32x32xbf16>, vector<32x2xbf16>, vector<32x2xf32> -> vector<32x2xf32>
    %46 = vector.broadcast %5 : vector<32x1xf32> to vector<32x2xf32>
    %47 = arith.addf %45, %46 : vector<32x2xf32>
    %cst_37 = arith.constant 0.000000e+00 : f32
    %48 = vector.broadcast %cst_37 : f32 to vector<32x2xf32>
    %49 = arith.maximumf %47, %48 : vector<32x2xf32>
    %50 = arith.addf %28, %49 : vector<32x2xf32>
    %c2_38 = arith.constant 2 : index
    %c0_39 = arith.constant 0 : index
    %c0_40 = arith.constant 0 : index
    %51 = vector.load %arg1[%c2_38, %c0_39, %c0_40] : memref<8x3x2xbf16, #tpu.memory_space<vmem>>, vector<1x3x2xbf16>
    %52 = vector.shape_cast %51 : vector<1x3x2xbf16> to vector<3x2xbf16>
    %c1_41 = arith.constant 1 : index
    %c0_42 = arith.constant 0 : index
    %c0_43 = arith.constant 0 : index
    %53 = vector.load %arg1[%c1_41, %c0_42, %c0_43] : memref<8x3x2xbf16, #tpu.memory_space<vmem>>, vector<1x3x2xbf16>
    %54 = vector.shape_cast %53 : vector<1x3x2xbf16> to vector<3x2xbf16>
    %c3 = arith.constant 3 : index
    %c0_44 = arith.constant 0 : index
    %c0_45 = arith.constant 0 : index
    %55 = vector.load %arg1[%c3, %c0_44, %c0_45] : memref<8x3x2xbf16, #tpu.memory_space<vmem>>, vector<1x3x2xbf16>
    %56 = vector.shape_cast %55 : vector<1x3x2xbf16> to vector<3x2xbf16>
    %cst_46 = arith.constant dense<0.000000e+00> : vector<32x2xf32>
    %57 = tpu.matmul %0, %52, %cst_46 {dimension_numbers = #tpu.dot_dimension_numbers<[1], [0], [0], [1], [0, 0, 1, 1], [], []>} : vector<32x3xbf16>, vector<3x2xbf16>, vector<32x2xf32> -> vector<32x2xf32>
    %cst_47 = arith.constant dense<0.000000e+00> : vector<32x2xf32>
    %58 = tpu.matmul %1, %54, %cst_47 {dimension_numbers = #tpu.dot_dimension_numbers<[1], [0], [0], [1], [0, 0, 1, 1], [], []>} : vector<32x3xbf16>, vector<3x2xbf16>, vector<32x2xf32> -> vector<32x2xf32>
    %59 = arith.addf %57, %58 : vector<32x2xf32>
    %cst_48 = arith.constant dense<0.000000e+00> : vector<32x2xf32>
    %60 = tpu.matmul %2, %56, %cst_48 {dimension_numbers = #tpu.dot_dimension_numbers<[1], [0], [0], [1], [0, 0, 1, 1], [], []>} : vector<32x3xbf16>, vector<3x2xbf16>, vector<32x2xf32> -> vector<32x2xf32>
    %61 = arith.addf %59, %60 : vector<32x2xf32>
    %62 = vector.broadcast %3 : vector<32x1xf32> to vector<32x2xf32>
    %63 = arith.addf %61, %62 : vector<32x2xf32>
    %cst_49 = arith.constant 0.000000e+00 : f32
    %64 = vector.broadcast %cst_49 : f32 to vector<32x2xf32>
    %65 = arith.maximumf %63, %64 : vector<32x2xf32>
    %66 = arith.truncf %65 : vector<32x2xf32> to vector<32x2xbf16>
    %cst_50 = arith.constant dense<0.000000e+00> : vector<32x2xf32>
    %67 = tpu.matmul %4, %66, %cst_50 {dimension_numbers = #tpu.dot_dimension_numbers<[1], [0], [0], [1], [0, 0, 1, 1], [], []>} : vector<32x32xbf16>, vector<32x2xbf16>, vector<32x2xf32> -> vector<32x2xf32>
    %68 = vector.broadcast %5 : vector<32x1xf32> to vector<32x2xf32>
    %69 = arith.addf %67, %68 : vector<32x2xf32>
    %cst_51 = arith.constant 0.000000e+00 : f32
    %70 = vector.broadcast %cst_51 : f32 to vector<32x2xf32>
    %71 = arith.maximumf %69, %70 : vector<32x2xf32>
    %72 = arith.addf %50, %71 : vector<32x2xf32>
    %c3_52 = arith.constant 3 : index
    %c0_53 = arith.constant 0 : index
    %c0_54 = arith.constant 0 : index
    %73 = vector.load %arg1[%c3_52, %c0_53, %c0_54] : memref<8x3x2xbf16, #tpu.memory_space<vmem>>, vector<1x3x2xbf16>
    %74 = vector.shape_cast %73 : vector<1x3x2xbf16> to vector<3x2xbf16>
    %c2_55 = arith.constant 2 : index
    %c0_56 = arith.constant 0 : index
    %c0_57 = arith.constant 0 : index
    %75 = vector.load %arg1[%c2_55, %c0_56, %c0_57] : memref<8x3x2xbf16, #tpu.memory_space<vmem>>, vector<1x3x2xbf16>
    %76 = vector.shape_cast %75 : vector<1x3x2xbf16> to vector<3x2xbf16>
    %c4 = arith.constant 4 : index
    %c0_58 = arith.constant 0 : index
    %c0_59 = arith.constant 0 : index
    %77 = vector.load %arg1[%c4, %c0_58, %c0_59] : memref<8x3x2xbf16, #tpu.memory_space<vmem>>, vector<1x3x2xbf16>
    %78 = vector.shape_cast %77 : vector<1x3x2xbf16> to vector<3x2xbf16>
    %cst_60 = arith.constant dense<0.000000e+00> : vector<32x2xf32>
    %79 = tpu.matmul %0, %74, %cst_60 {dimension_numbers = #tpu.dot_dimension_numbers<[1], [0], [0], [1], [0, 0, 1, 1], [], []>} : vector<32x3xbf16>, vector<3x2xbf16>, vector<32x2xf32> -> vector<32x2xf32>
    %cst_61 = arith.constant dense<0.000000e+00> : vector<32x2xf32>
    %80 = tpu.matmul %1, %76, %cst_61 {dimension_numbers = #tpu.dot_dimension_numbers<[1], [0], [0], [1], [0, 0, 1, 1], [], []>} : vector<32x3xbf16>, vector<3x2xbf16>, vector<32x2xf32> -> vector<32x2xf32>
    %81 = arith.addf %79, %80 : vector<32x2xf32>
    %cst_62 = arith.constant dense<0.000000e+00> : vector<32x2xf32>
    %82 = tpu.matmul %2, %78, %cst_62 {dimension_numbers = #tpu.dot_dimension_numbers<[1], [0], [0], [1], [0, 0, 1, 1], [], []>} : vector<32x3xbf16>, vector<3x2xbf16>, vector<32x2xf32> -> vector<32x2xf32>
    %83 = arith.addf %81, %82 : vector<32x2xf32>
    %84 = vector.broadcast %3 : vector<32x1xf32> to vector<32x2xf32>
    %85 = arith.addf %83, %84 : vector<32x2xf32>
    %cst_63 = arith.constant 0.000000e+00 : f32
    %86 = vector.broadcast %cst_63 : f32 to vector<32x2xf32>
    %87 = arith.maximumf %85, %86 : vector<32x2xf32>
    %88 = arith.truncf %87 : vector<32x2xf32> to vector<32x2xbf16>
    %cst_64 = arith.constant dense<0.000000e+00> : vector<32x2xf32>
    %89 = tpu.matmul %4, %88, %cst_64 {dimension_numbers = #tpu.dot_dimension_numbers<[1], [0], [0], [1], [0, 0, 1, 1], [], []>} : vector<32x32xbf16>, vector<32x2xbf16>, vector<32x2xf32> -> vector<32x2xf32>
    %90 = vector.broadcast %5 : vector<32x1xf32> to vector<32x2xf32>
    %91 = arith.addf %89, %90 : vector<32x2xf32>
    %cst_65 = arith.constant 0.000000e+00 : f32
    %92 = vector.broadcast %cst_65 : f32 to vector<32x2xf32>
    %93 = arith.maximumf %91, %92 : vector<32x2xf32>
    %94 = arith.addf %72, %93 : vector<32x2xf32>
    %c4_66 = arith.constant 4 : index
    %c0_67 = arith.constant 0 : index
    %c0_68 = arith.constant 0 : index
    %95 = vector.load %arg1[%c4_66, %c0_67, %c0_68] : memref<8x3x2xbf16, #tpu.memory_space<vmem>>, vector<1x3x2xbf16>
    %96 = vector.shape_cast %95 : vector<1x3x2xbf16> to vector<3x2xbf16>
    %c3_69 = arith.constant 3 : index
    %c0_70 = arith.constant 0 : index
    %c0_71 = arith.constant 0 : index
    %97 = vector.load %arg1[%c3_69, %c0_70, %c0_71] : memref<8x3x2xbf16, #tpu.memory_space<vmem>>, vector<1x3x2xbf16>
    %98 = vector.shape_cast %97 : vector<1x3x2xbf16> to vector<3x2xbf16>
    %c5 = arith.constant 5 : index
    %c0_72 = arith.constant 0 : index
    %c0_73 = arith.constant 0 : index
    %99 = vector.load %arg1[%c5, %c0_72, %c0_73] : memref<8x3x2xbf16, #tpu.memory_space<vmem>>, vector<1x3x2xbf16>
    %100 = vector.shape_cast %99 : vector<1x3x2xbf16> to vector<3x2xbf16>
    %cst_74 = arith.constant dense<0.000000e+00> : vector<32x2xf32>
    %101 = tpu.matmul %0, %96, %cst_74 {dimension_numbers = #tpu.dot_dimension_numbers<[1], [0], [0], [1], [0, 0, 1, 1], [], []>} : vector<32x3xbf16>, vector<3x2xbf16>, vector<32x2xf32> -> vector<32x2xf32>
    %cst_75 = arith.constant dense<0.000000e+00> : vector<32x2xf32>
    %102 = tpu.matmul %1, %98, %cst_75 {dimension_numbers = #tpu.dot_dimension_numbers<[1], [0], [0], [1], [0, 0, 1, 1], [], []>} : vector<32x3xbf16>, vector<3x2xbf16>, vector<32x2xf32> -> vector<32x2xf32>
    %103 = arith.addf %101, %102 : vector<32x2xf32>
    %cst_76 = arith.constant dense<0.000000e+00> : vector<32x2xf32>
    %104 = tpu.matmul %2, %100, %cst_76 {dimension_numbers = #tpu.dot_dimension_numbers<[1], [0], [0], [1], [0, 0, 1, 1], [], []>} : vector<32x3xbf16>, vector<3x2xbf16>, vector<32x2xf32> -> vector<32x2xf32>
    %105 = arith.addf %103, %104 : vector<32x2xf32>
    %106 = vector.broadcast %3 : vector<32x1xf32> to vector<32x2xf32>
    %107 = arith.addf %105, %106 : vector<32x2xf32>
    %cst_77 = arith.constant 0.000000e+00 : f32
    %108 = vector.broadcast %cst_77 : f32 to vector<32x2xf32>
    %109 = arith.maximumf %107, %108 : vector<32x2xf32>
    %110 = arith.truncf %109 : vector<32x2xf32> to vector<32x2xbf16>
    %cst_78 = arith.constant dense<0.000000e+00> : vector<32x2xf32>
    %111 = tpu.matmul %4, %110, %cst_78 {dimension_numbers = #tpu.dot_dimension_numbers<[1], [0], [0], [1], [0, 0, 1, 1], [], []>} : vector<32x32xbf16>, vector<32x2xbf16>, vector<32x2xf32> -> vector<32x2xf32>
    %112 = vector.broadcast %5 : vector<32x1xf32> to vector<32x2xf32>
    %113 = arith.addf %111, %112 : vector<32x2xf32>
    %cst_79 = arith.constant 0.000000e+00 : f32
    %114 = vector.broadcast %cst_79 : f32 to vector<32x2xf32>
    %115 = arith.maximumf %113, %114 : vector<32x2xf32>
    %116 = arith.addf %94, %115 : vector<32x2xf32>
    %c5_80 = arith.constant 5 : index
    %c0_81 = arith.constant 0 : index
    %c0_82 = arith.constant 0 : index
    %117 = vector.load %arg1[%c5_80, %c0_81, %c0_82] : memref<8x3x2xbf16, #tpu.memory_space<vmem>>, vector<1x3x2xbf16>
    %118 = vector.shape_cast %117 : vector<1x3x2xbf16> to vector<3x2xbf16>
    %c4_83 = arith.constant 4 : index
    %c0_84 = arith.constant 0 : index
    %c0_85 = arith.constant 0 : index
    %119 = vector.load %arg1[%c4_83, %c0_84, %c0_85] : memref<8x3x2xbf16, #tpu.memory_space<vmem>>, vector<1x3x2xbf16>
    %120 = vector.shape_cast %119 : vector<1x3x2xbf16> to vector<3x2xbf16>
    %c6 = arith.constant 6 : index
    %c0_86 = arith.constant 0 : index
    %c0_87 = arith.constant 0 : index
    %121 = vector.load %arg1[%c6, %c0_86, %c0_87] : memref<8x3x2xbf16, #tpu.memory_space<vmem>>, vector<1x3x2xbf16>
    %122 = vector.shape_cast %121 : vector<1x3x2xbf16> to vector<3x2xbf16>
    %cst_88 = arith.constant dense<0.000000e+00> : vector<32x2xf32>
    %123 = tpu.matmul %0, %118, %cst_88 {dimension_numbers = #tpu.dot_dimension_numbers<[1], [0], [0], [1], [0, 0, 1, 1], [], []>} : vector<32x3xbf16>, vector<3x2xbf16>, vector<32x2xf32> -> vector<32x2xf32>
    %cst_89 = arith.constant dense<0.000000e+00> : vector<32x2xf32>
    %124 = tpu.matmul %1, %120, %cst_89 {dimension_numbers = #tpu.dot_dimension_numbers<[1], [0], [0], [1], [0, 0, 1, 1], [], []>} : vector<32x3xbf16>, vector<3x2xbf16>, vector<32x2xf32> -> vector<32x2xf32>
    %125 = arith.addf %123, %124 : vector<32x2xf32>
    %cst_90 = arith.constant dense<0.000000e+00> : vector<32x2xf32>
    %126 = tpu.matmul %2, %122, %cst_90 {dimension_numbers = #tpu.dot_dimension_numbers<[1], [0], [0], [1], [0, 0, 1, 1], [], []>} : vector<32x3xbf16>, vector<3x2xbf16>, vector<32x2xf32> -> vector<32x2xf32>
    %127 = arith.addf %125, %126 : vector<32x2xf32>
    %128 = vector.broadcast %3 : vector<32x1xf32> to vector<32x2xf32>
    %129 = arith.addf %127, %128 : vector<32x2xf32>
    %cst_91 = arith.constant 0.000000e+00 : f32
    %130 = vector.broadcast %cst_91 : f32 to vector<32x2xf32>
    %131 = arith.maximumf %129, %130 : vector<32x2xf32>
    %132 = arith.truncf %131 : vector<32x2xf32> to vector<32x2xbf16>
    %cst_92 = arith.constant dense<0.000000e+00> : vector<32x2xf32>
    %133 = tpu.matmul %4, %132, %cst_92 {dimension_numbers = #tpu.dot_dimension_numbers<[1], [0], [0], [1], [0, 0, 1, 1], [], []>} : vector<32x32xbf16>, vector<32x2xbf16>, vector<32x2xf32> -> vector<32x2xf32>
    %134 = vector.broadcast %5 : vector<32x1xf32> to vector<32x2xf32>
    %135 = arith.addf %133, %134 : vector<32x2xf32>
    %cst_93 = arith.constant 0.000000e+00 : f32
    %136 = vector.broadcast %cst_93 : f32 to vector<32x2xf32>
    %137 = arith.maximumf %135, %136 : vector<32x2xf32>
    %138 = arith.addf %116, %137 : vector<32x2xf32>
    %c6_94 = arith.constant 6 : index
    %c0_95 = arith.constant 0 : index
    %c0_96 = arith.constant 0 : index
    %139 = vector.load %arg1[%c6_94, %c0_95, %c0_96] : memref<8x3x2xbf16, #tpu.memory_space<vmem>>, vector<1x3x2xbf16>
    %140 = vector.shape_cast %139 : vector<1x3x2xbf16> to vector<3x2xbf16>
    %c5_97 = arith.constant 5 : index
    %c0_98 = arith.constant 0 : index
    %c0_99 = arith.constant 0 : index
    %141 = vector.load %arg1[%c5_97, %c0_98, %c0_99] : memref<8x3x2xbf16, #tpu.memory_space<vmem>>, vector<1x3x2xbf16>
    %142 = vector.shape_cast %141 : vector<1x3x2xbf16> to vector<3x2xbf16>
    %c7_100 = arith.constant 7 : index
    %c0_101 = arith.constant 0 : index
    %c0_102 = arith.constant 0 : index
    %143 = vector.load %arg1[%c7_100, %c0_101, %c0_102] : memref<8x3x2xbf16, #tpu.memory_space<vmem>>, vector<1x3x2xbf16>
    %144 = vector.shape_cast %143 : vector<1x3x2xbf16> to vector<3x2xbf16>
    %cst_103 = arith.constant dense<0.000000e+00> : vector<32x2xf32>
    %145 = tpu.matmul %0, %140, %cst_103 {dimension_numbers = #tpu.dot_dimension_numbers<[1], [0], [0], [1], [0, 0, 1, 1], [], []>} : vector<32x3xbf16>, vector<3x2xbf16>, vector<32x2xf32> -> vector<32x2xf32>
    %cst_104 = arith.constant dense<0.000000e+00> : vector<32x2xf32>
    %146 = tpu.matmul %1, %142, %cst_104 {dimension_numbers = #tpu.dot_dimension_numbers<[1], [0], [0], [1], [0, 0, 1, 1], [], []>} : vector<32x3xbf16>, vector<3x2xbf16>, vector<32x2xf32> -> vector<32x2xf32>
    %147 = arith.addf %145, %146 : vector<32x2xf32>
    %cst_105 = arith.constant dense<0.000000e+00> : vector<32x2xf32>
    %148 = tpu.matmul %2, %144, %cst_105 {dimension_numbers = #tpu.dot_dimension_numbers<[1], [0], [0], [1], [0, 0, 1, 1], [], []>} : vector<32x3xbf16>, vector<3x2xbf16>, vector<32x2xf32> -> vector<32x2xf32>
    %149 = arith.addf %147, %148 : vector<32x2xf32>
    %150 = vector.broadcast %3 : vector<32x1xf32> to vector<32x2xf32>
    %151 = arith.addf %149, %150 : vector<32x2xf32>
    %cst_106 = arith.constant 0.000000e+00 : f32
    %152 = vector.broadcast %cst_106 : f32 to vector<32x2xf32>
    %153 = arith.maximumf %151, %152 : vector<32x2xf32>
    %154 = arith.truncf %153 : vector<32x2xf32> to vector<32x2xbf16>
    %cst_107 = arith.constant dense<0.000000e+00> : vector<32x2xf32>
    %155 = tpu.matmul %4, %154, %cst_107 {dimension_numbers = #tpu.dot_dimension_numbers<[1], [0], [0], [1], [0, 0, 1, 1], [], []>} : vector<32x32xbf16>, vector<32x2xbf16>, vector<32x2xf32> -> vector<32x2xf32>
    %156 = vector.broadcast %5 : vector<32x1xf32> to vector<32x2xf32>
    %157 = arith.addf %155, %156 : vector<32x2xf32>
    %cst_108 = arith.constant 0.000000e+00 : f32
    %158 = vector.broadcast %cst_108 : f32 to vector<32x2xf32>
    %159 = arith.maximumf %157, %158 : vector<32x2xf32>
    %160 = arith.addf %138, %159 : vector<32x2xf32>
    %c7_109 = arith.constant 7 : index
    %c0_110 = arith.constant 0 : index
    %c0_111 = arith.constant 0 : index
    %161 = vector.load %arg1[%c7_109, %c0_110, %c0_111] : memref<8x3x2xbf16, #tpu.memory_space<vmem>>, vector<1x3x2xbf16>
    %162 = vector.shape_cast %161 : vector<1x3x2xbf16> to vector<3x2xbf16>
    %c6_112 = arith.constant 6 : index
    %c0_113 = arith.constant 0 : index
    %c0_114 = arith.constant 0 : index
    %163 = vector.load %arg1[%c6_112, %c0_113, %c0_114] : memref<8x3x2xbf16, #tpu.memory_space<vmem>>, vector<1x3x2xbf16>
    %164 = vector.shape_cast %163 : vector<1x3x2xbf16> to vector<3x2xbf16>
    %c0_115 = arith.constant 0 : index
    %c0_116 = arith.constant 0 : index
    %c0_117 = arith.constant 0 : index
    %165 = vector.load %arg1[%c0_115, %c0_116, %c0_117] : memref<8x3x2xbf16, #tpu.memory_space<vmem>>, vector<1x3x2xbf16>
    %166 = vector.shape_cast %165 : vector<1x3x2xbf16> to vector<3x2xbf16>
    %cst_118 = arith.constant dense<0.000000e+00> : vector<32x2xf32>
    %167 = tpu.matmul %0, %162, %cst_118 {dimension_numbers = #tpu.dot_dimension_numbers<[1], [0], [0], [1], [0, 0, 1, 1], [], []>} : vector<32x3xbf16>, vector<3x2xbf16>, vector<32x2xf32> -> vector<32x2xf32>
    %cst_119 = arith.constant dense<0.000000e+00> : vector<32x2xf32>
    %168 = tpu.matmul %1, %164, %cst_119 {dimension_numbers = #tpu.dot_dimension_numbers<[1], [0], [0], [1], [0, 0, 1, 1], [], []>} : vector<32x3xbf16>, vector<3x2xbf16>, vector<32x2xf32> -> vector<32x2xf32>
    %169 = arith.addf %167, %168 : vector<32x2xf32>
    %cst_120 = arith.constant dense<0.000000e+00> : vector<32x2xf32>
    %170 = tpu.matmul %2, %166, %cst_120 {dimension_numbers = #tpu.dot_dimension_numbers<[1], [0], [0], [1], [0, 0, 1, 1], [], []>} : vector<32x3xbf16>, vector<3x2xbf16>, vector<32x2xf32> -> vector<32x2xf32>
    %171 = arith.addf %169, %170 : vector<32x2xf32>
    %172 = vector.broadcast %3 : vector<32x1xf32> to vector<32x2xf32>
    %173 = arith.addf %171, %172 : vector<32x2xf32>
    %cst_121 = arith.constant 0.000000e+00 : f32
    %174 = vector.broadcast %cst_121 : f32 to vector<32x2xf32>
    %175 = arith.maximumf %173, %174 : vector<32x2xf32>
    %176 = arith.truncf %175 : vector<32x2xf32> to vector<32x2xbf16>
    %cst_122 = arith.constant dense<0.000000e+00> : vector<32x2xf32>
    %177 = tpu.matmul %4, %176, %cst_122 {dimension_numbers = #tpu.dot_dimension_numbers<[1], [0], [0], [1], [0, 0, 1, 1], [], []>} : vector<32x32xbf16>, vector<32x2xbf16>, vector<32x2xf32> -> vector<32x2xf32>
    %178 = vector.broadcast %5 : vector<32x1xf32> to vector<32x2xf32>
    %179 = arith.addf %177, %178 : vector<32x2xf32>
    %cst_123 = arith.constant 0.000000e+00 : f32
    %180 = vector.broadcast %cst_123 : f32 to vector<32x2xf32>
    %181 = arith.maximumf %179, %180 : vector<32x2xf32>
    %182 = arith.addf %160, %181 : vector<32x2xf32>
    %c0_124 = arith.constant 0 : index
    %c0_125 = arith.constant 0 : index
    %183 = vector.load %arg8[%c0_124, %c0_125] : memref<1x32xf32, #tpu.memory_space<vmem>>, vector<1x32xf32>
    %cst_126 = arith.constant dense<0.000000e+00> : vector<1x2xf32>
    %184 = tpu.matmul %183, %182, %cst_126 {dimension_numbers = #tpu.dot_dimension_numbers<[1], [0], [0], [1], [0, 0, 1, 1], [], []>} : vector<1x32xf32>, vector<32x2xf32>, vector<1x2xf32> -> vector<1x2xf32>
    %c0_127 = arith.constant 0 : index
    %c0_128 = arith.constant 0 : index
    %185 = vector.load %arg9[%c0_127, %c0_128] : memref<1x2xf32, #tpu.memory_space<vmem>>, vector<1x2xf32>
    tpu.vector_store %arg9[%c0_127, %c0_128], %184 {strides = array<i32>} : memref<1x2xf32, #tpu.memory_space<vmem>>, vector<1x2xf32>,
    return
  }
  func.func @transform_0(%arg0: i32) -> (i32, i32, i32) {
    %c0_i32 = arith.constant 0 : i32
    %c0_i32_0 = arith.constant 0 : i32
    %c0_i32_1 = arith.constant 0 : i32
    return %c0_i32, %c0_i32_0, %arg0 : i32, i32, i32
  }
  func.func @transform_1(%arg0: i32) -> (i32, i32) {
    %c0_i32 = arith.constant 0 : i32
    %c0_i32_0 = arith.constant 0 : i32
    %c0_i32_1 = arith.constant 0 : i32
    return %c0_i32, %c0_i32_0 : i32, i32
  }
  func.func @transform_2(%arg0: i32) -> (i32, i32) {
    %c0_i32 = arith.constant 0 : i32
    %c0_i32_0 = arith.constant 0 : i32
    %c0_i32_1 = arith.constant 0 : i32
    return %c0_i32, %c0_i32_0 : i32, i32
  }
  func.func @transform_3(%arg0: i32) -> (i32, i32) {
    %c0_i32 = arith.constant 0 : i32
    %c0_i32_0 = arith.constant 0 : i32
    %c0_i32_1 = arith.constant 0 : i32
    return %c0_i32, %c0_i32_0 : i32, i32
  }
  func.func @transform_4(%arg0: i32) -> (i32, i32) {
    %c0_i32 = arith.constant 0 : i32
    %c0_i32_0 = arith.constant 0 : i32
    %c0_i32_1 = arith.constant 0 : i32
    return %c0_i32, %c0_i32_0 : i32, i32
  }
  func.func @transform_5(%arg0: i32) -> (i32, i32) {
    %c0_i32 = arith.constant 0 : i32
    %c0_i32_0 = arith.constant 0 : i32
    %c0_i32_1 = arith.constant 0 : i32
    return %c0_i32, %c0_i32_0 : i32, i32
  }
  func.func @transform_6(%arg0: i32) -> (i32, i32) {
    %c0_i32 = arith.constant 0 : i32
    %c0_i32_0 = arith.constant 0 : i32
    %c0_i32_1 = arith.constant 0 : i32
    return %c0_i32, %c0_i32_0 : i32, i32
  }
  func.func @transform_7(%arg0: i32) -> (i32, i32) {
    %c0_i32 = arith.constant 0 : i32
    %c0_i32_0 = arith.constant 0 : i32
    %c0_i32_1 = arith.constant 0 : i32
    return %c0_i32, %c0_i32_0 : i32, i32
  }
  func.func @transform_8(%arg0: i32) -> (i32, i32) {
    %c0_i32 = arith.constant 0 : i32
    %c0_i32_0 = arith.constant 0 : i32
    return %c0_i32, %arg0 : i32, i32
  }
}

</mosaic_0001>

<bundles_post_ra>
// kernel: cvrp_critic_forward.1
= control target key start
LH: loop header
LB: loop body
LE: loop exit
PB: predicated region body
PF: predicated region fallthrough
CT: control target
= control target key end

     0   :  { %vm76_vm0 = vcmask 1040384   ;;  %vm77_vm1 = vcmask 1041408   ;;  %vm69_vm2 = vcmask 23552   ;;  %v2449_v1 = vmov 65535   ;;  %s2902_s0 = inlined_call_operand.vmem [shape: bf16[8,3,2], index: 0, kind: input, shape index: {}]   ;;  %s2903_s2 = inlined_call_operand.vmem [shape: bf16[32,3], index: 2, kind: input, shape index: {}]   ;;  %s2904_s1 = inlined_call_operand.vmem [shape: bf16[32,3], index: 1, kind: input, shape index: {}]   ;;  %s2905_s3 = inlined_call_operand.vmem [shape: bf16[32,3], index: 3, kind: input, shape index: {}]   ;;  %s2906_s4 = inlined_call_operand.vmem [shape: f32[32,1], index: 4, kind: input, shape index: {}]   ;;  %s2907_s6 = inlined_call_operand.vmem [shape: f32[32,1], index: 6, kind: input, shape index: {}]   ;;  %s2908_s5 = inlined_call_operand.vmem [shape: bf16[32,32], index: 5, kind: input, shape index: {}]   ;;  %s2909_s7 = inlined_call_operand.vmem [shape: f32[1,32], index: 7, kind: input, shape index: {}]   ;;  %s2910_s8 = inlined_call_operand.vmem [shape: f32[1,2], index: 8, kind: output, shape index: {}]  }
   0x1   :  { %v2027_v0 = vld [vmem:[%s2902_s0 + $0xe] sm:$0x3]  ;;  %v78_v2 = vsel %vm76_vm0, 4294967295, %v2449_v1  ;;  %v54_v3 = vld [vmem:[%s2902_s0] sm:$0x3]  ;;  %v2450_v14 = vmov 0  }
   0x2   :  { %v2507_v4 = vld [vmem:[%s2903_s2] sm:$0xff]   ;;  %v2509_v5 = vsel %vm77_vm1, %v78_v2, 0  ;;  %v2529_v9 = vld [vmem:[%s2903_s2 + $0x8] sm:$0xff]   ;;  %2439 = vset.pattern.permute.xlu0 %v2450_v14  ;;  %2440 = vset.pattern.permute.xlu1 %v2450_v14  ;;  %v44_v15 = vld [vmem:[%s2906_s4 + $0x10] sm:$0xff]  ;;  %vm332_vm3 = vcmask 261120   ;;  %vm2452_vm4 = vmmov 0  }
   0x3   :  { %v2514_v6 = vld [vmem:[%s2904_s1] sm:$0xff]   ;;  %v2517_v7 = vand.u32 %v2027_v0, %v2509_v5  ;;  %v2520_v8 = vand.u32 %v2509_v5, %v54_v3  ;;  %2218 = vmatprep.mubr.msk.bf16.mxu0 %vm69_vm2, %v2507_v4  ;;  %v2536_v10 = vld [vmem:[%s2904_s1 + $0x8] sm:$0xff]   ;;  %284 = vperm.xlu0 %2439, %v44_v15   ;;  %v45_v17 = vld [vmem:[%s2906_s4 + $0x18] sm:$0xff]  ;;  %vm2021_vm5 = vcmask 8192  }
   0x4   :  { %2224 = vmatprep.mubr.msk.bf16.mxu1 %vm69_vm2, %v2514_v6  ;;  %v2028_v11 = vld [vmem:[%s2902_s0 + $0x2] sm:$0x3]  ;;  %v43_v18 = vld [vmem:[%s2906_s4 + $0x8] sm:$0xff]  ;;  %v53_v20 = vld [vmem:[%s2907_s6 + $0x18] sm:$0xff] }
   0x5   :  { %2216 = vmatprep.subr.bf16.mxu0 %v2517_v7  ;;  %2222 = vmatprep.subr.bf16.mxu1 %v2520_v8  ;;  %v2544_v12 = vand.u32 %v2028_v11, %v2509_v5  ;;  %v2549_v13 = vld [vmem:[%s2905_s3] sm:$0xff]   ;;  %v2575_v19 = vld [vmem:[%s2905_s3 + $0x8] sm:$0xff]   ;;  %v52_v21 = vld [vmem:[%s2907_s6 + $0x10] sm:$0xff] }
   0x6   :  { %2217 = vmatpush3.bf16.msra.mxu0 %v2517_v7  ;;  %2223 = vmatpush3.bf16.msra.mxu1 %v2520_v8  ;;  %v42_v16 = vld [vmem:[%s2906_s4] sm:$0xff]  ;;  %v51_v22 = vld [vmem:[%s2907_s6 + $0x8] sm:$0xff] }
   0x7   :  { %2228 = vmatprep.subr.bf16.mxu0 %v2544_v12  ;;  %274 = vperm.xlu1 %2440, %v42_v16   ;;  %v50_v23 = vld [vmem:[%s2907_s6] sm:$0xff]  ;;  %v2638_v61 = vld [vmem:[%s2908_s5 + $0x8] sm:$0xff]  }
   0x8   :  { %289 = vperm.xlu0 %2439, %v45_v17   ;;  %v2601_v24 = vld [vmem:[%s2908_s5] sm:$0xff]  }
   0x9   :  { %2219 = vmatmul.mubr.msk.bf16.vlgmr.msra.gmra.mxu0 %vm69_vm2, %v2529_v9  ;;  %2225 = vmatmul.mubr.msk.bf16.vlgmr.msra.gmra.mxu1 %vm69_vm2, %v2536_v10  ;;  %v2045_v25 = vld [vmem:[%s2902_s0 + $0x4] sm:$0x3]  ;;  %v2054_v62 = vld [vmem:[%s2902_s0 + $0x6] sm:$0x3] }
   0xa   :  { %2229 = vmatpush3.bf16.msra.mxu0 %v2544_v12  ;;  %2230 = vmatprep.mubr.msk.bf16.mxu0 %vm69_vm2, %v2549_v13  ;;  %v2609_v26 = vand.u32 %v2045_v25, %v2509_v5  ;;  %v2654_v63 = vand.u32 %v2054_v62, %v2509_v5 }
   0xb   :  { %2242 = vmatprep.subr.bf16.mxu0 %v2520_v8  ;;  %279 = vperm.xlu1 %2440, %v43_v18  }
   0xc   :  { %319 = vperm.xlu0 %2439, %v53_v20   ;;  %2238 = vmatprep.mubr.msk.bf16.mxu1 %vm332_vm3, %v2601_v24 }
   0xf   :  { %314 = vperm.xlu1 %2440, %v52_v21  }
  0x10   :  { %309 = vperm.xlu0 %2439, %v51_v22  }
  0x11   :  { %2231 = vmatmul.mubr.msk.bf16.vlgmr.msra.gmra.mxu0 %vm69_vm2, %v2575_v19 }
  0x12   :  { %2243 = vmatpush3.bf16.msra.mxu0 %v2520_v8  ;;  %2244 = vmatprep.mubr.msk.bf16.mxu0 %vm69_vm2, %v2507_v4 }
  0x13   :  { %304 = vperm.xlu1 %2440, %v50_v23   ;;  %2254 = vmatprep.subr.bf16.mxu0 %v2609_v26 }
  0x19   :  { %2245 = vmatmul.mubr.msk.bf16.vlgmr.msra.gmra.mxu0 %vm69_vm2, %v2529_v9 }
  0x1a   :  { %2256 = vmatprep.mubr.msk.bf16.mxu0 %vm69_vm2, %v2549_v13  ;;  %2255 = vmatpush3.bf16.msra.mxu0 %v2609_v26 }
  0x1b   :  { %2268 = vmatprep.subr.bf16.mxu0 %v2544_v12 }
  0x21   :  { %2257 = vmatmul.mubr.msk.bf16.vlgmr.msra.gmra.mxu0 %vm69_vm2, %v2575_v19 }
  0x22   :  { %2269 = vmatpush3.bf16.msra.mxu0 %v2544_v12  ;;  %2270 = vmatprep.mubr.msk.bf16.mxu0 %vm69_vm2, %v2507_v4 }
  0x23   :  { %2280 = vmatprep.subr.bf16.mxu0 %v2654_v63 }
  0x29   :  { %2271 = vmatmul.mubr.msk.bf16.vlgmr.msra.gmra.mxu0 %vm69_vm2, %v2529_v9 }
  0x2a   :  { %2282 = vmatprep.mubr.msk.bf16.mxu0 %vm69_vm2, %v2549_v13  ;;  %2281 = vmatpush3.bf16.msra.mxu0 %v2654_v63 }
  0x2b   :  { %2294 = vmatprep.subr.bf16.mxu0 %v2609_v26 }
  0x31   :  { %2283 = vmatmul.mubr.msk.bf16.vlgmr.msra.gmra.mxu0 %vm69_vm2, %v2575_v19 }
  0x32   :  { %2295 = vmatpush3.bf16.msra.mxu0 %v2609_v26  ;;  %2296 = vmatprep.mubr.msk.bf16.mxu0 %vm69_vm2, %v2507_v4 }
  0x39   :  { %2297 = vmatmul.mubr.msk.bf16.vlgmr.msra.gmra.mxu0 %vm69_vm2, %v2529_v9 }
  0x3a   :  { %2308 = vmatprep.mubr.msk.bf16.mxu0 %vm69_vm2, %v2549_v13 }
  0x7e   :  { %v2623_v35 = vpop.permute.xlu0 %284 }
  0x82   :  { %v2625_v37 = vpop.permute.xlu1 %274 }
  0x83   :  { %v2628_v48 = vpop.permute.xlu0 %289 }
  0x86   :  { %v2632_v53 = vpop.permute.xlu1 %279 }
  0xc9   :  { %v2220_v27 = vpop.f32.mrf.mxu0  ;;  %v2226_v28 = vpop.f32.mrf.mxu1 }
  0xca   :  { %v194_v34 = vadd.f32 %v2226_v28, %v2220_v27 }
  0xcb   :  { %v117_v29 = vpop.f32.mrf.mxu0  ;;  %v185_v30 = vpop.f32.mrf.mxu1 }
  0xcc   :  { %v186_v38 = vadd.f32 %v185_v30, %v117_v29 }
  0xcd   :  { %v2221_v31 = vpop.f32.mrf.mxu0  ;;  %v2227_v32 = vpop.f32.mrf.mxu1 }
  0xce   :  { %v197_v42 = vadd.f32 %v2227_v32, %v2221_v31 }
  0xcf   :  { %v120_v33 = vpop.f32.mrf.mxu0  ;;  %v188_v40 = vpop.f32.mrf.mxu1 }
  0xd0   :  { %v189_v45 = vadd.f32 %v188_v40, %v120_v33 }
  0xd1   :  { %v2232_v36 = vpop.f32.mrf.mxu0 }
  0xd2   :  { %v270_v39 = vadd.f32 %v2232_v36, %v194_v34 }
  0xd3   :  { %v253_v41 = vpop.f32.mrf.mxu0 }
  0xd4   :  { %v268_v43 = vadd.f32 %v253_v41, %v186_v38  ;;  %v294_v46 = vadd.f32 %v2623_v35, %v270_v39 }
  0xd5   :  { %v2233_v44 = vpop.f32.mrf.mxu0 }
  0xd6   :  { %v271_v47 = vadd.f32 %v2233_v44, %v197_v42  ;;  %v292_v50 = vadd.f32 %v2625_v37, %v268_v43  ;;  %v298_v54 = vmax.f32 %v294_v46, 0.0 }
  0xd7   :  { %v256_v49 = vpop.f32.mrf.mxu0 }
  0xd8   :  { %v295_v51 = vadd.f32 %v2628_v48, %v271_v47  ;;  %v269_v52 = vadd.f32 %v256_v49, %v189_v45  ;;  %v296_v57 = vmax.f32 %v292_v50, 0.0  ;;  %v2063_v47 = vld [vmem:[%s2902_s0 + $0x8] sm:$0x3] }
  0xd9   :  { %v2246_v0 = vpop.f32.mrf.mxu0  ;;  %v2688_v49 = vand.u32 %v2063_v47, %v2509_v5 }
  0xda   :  { %v299_v55 = vmax.f32 %v295_v51, 0.0  ;;  %v293_v56 = vadd.f32 %v2632_v53, %v269_v52  ;;  %v2702_v51 = vpop.permute.xlu1 %314 }
  0xdb   :  { %v432_v1 = vpop.f32.mrf.mxu0  ;;  %2306 = vmatprep.subr.bf16.mxu0 %v2688_v49 }
  0xdc   :  { %v297_v58 = vmax.f32 %v293_v56, 0.0  ;;  %v301_v59 = vpack.c.bf16 %v299_v55, %v298_v54  ;;  %2307 = vmatpush3.bf16.msra.mxu0 %v2688_v49  ;;  %v2704_v54 = vpop.permute.xlu0 %319 }
  0xdd   :  { %v2247_v2 = vpop.f32.mrf.mxu0  ;;  %2320 = vmatprep.subr.bf16.mxu0 %v2654_v63 }
  0xde   :  { %2234 = vmatprep.subr.bf16.mxu1 %v301_v59  ;;  %v300_v60 = vpack.c.bf16 %v297_v58, %v296_v57  ;;  %v2706_v55 = vpop.permute.xlu1 %304 }
  0xdf   :  { %2235 = vmatpush3.bf16.msra.mxu1 %v301_v59  ;;  %v435_v11 = vpop.f32.mrf.mxu0  ;;  %2309 = vmatmul.mubr.msk.bf16.vlgmr.msra.gmra.mxu0 %vm69_vm2, %v2575_v19 }
  0xe0   :  { %2236 = vmatprep.subr.bf16.mxu1 %v300_v60  ;;  %2321 = vmatpush3.bf16.msra.mxu0 %v2654_v63 }
  0xe1   :  { %v2258_v15 = vpop.f32.mrf.mxu0  ;;  %2322 = vmatprep.mubr.msk.bf16.mxu0 %vm69_vm2, %v2507_v4 }
  0xe3   :  { %2237 = vmatpush3.bf16.msra.mxu1 %v300_v60  ;;  %v533_v17 = vpop.f32.mrf.mxu0 }
  0xe4   :  { %2248 = vmatprep.subr.bf16.mxu1 %v2544_v12 }
  0xe5   :  { %v2259_v25 = vpop.f32.mrf.mxu0 }
  0xe6   :  { %2239 = vmatmul.mubr.msk.bf16.vlgmr.msra.gmra.mxu1 %vm332_vm3, %v2638_v61 }
  0xe7   :  { %2249 = vmatpush3.bf16.msra.mxu1 %v2544_v12  ;;  %2250 = vmatprep.mubr.msk.bf16.mxu1 %vm69_vm2, %v2514_v6  ;;  %v536_v34 = vpop.f32.mrf.mxu0 }
  0xe8   :  { %2323 = vmatmul.mubr.msk.bf16.vlgmr.msra.gmra.mxu0 %vm69_vm2, %v2529_v9 }
  0xe9   :  { %2334 = vmatprep.mubr.msk.bf16.mxu0 %vm69_vm2, %v2549_v13 }
  0xee   :  { %2251 = vmatmul.mubr.msk.bf16.vlgmr.msra.gmra.mxu1 %vm69_vm2, %v2536_v10 }
  0xef   :  { %2264 = vmatprep.mubr.msk.bf16.mxu1 %vm332_vm3, %v2601_v24 }
 0x1a6   :  { %v2240_v3 = vpop.f32.mrf.mxu1 }
 0x1a7   :  { %v382_v56 = vadd.f32 %v2240_v3, %v2702_v51 }
 0x1a8   :  { %v373_v12 = vpop.f32.mrf.mxu1 }
 0x1a9   :  { %v374_v57 = vadd.f32 %v373_v12, %v2706_v55 }
 0x1aa   :  { %v2241_v14 = vpop.f32.mrf.mxu1 }
 0x1ac   :  { %v2668_v16 = vpop.f32.mrf.mxu1 }
 0x1ae   :  { %v2252_v18 = vpop.f32.mrf.mxu1 }
 0x1af   :  { %v490_v20 = vadd.f32 %v2252_v18, %v2246_v0  ;;  %v2711_v0 = vpop.permute.xlu0 %309 }
 0x1b0   :  { %v481_v21 = vpop.f32.mrf.mxu1  ;;  %v377_v3 = vadd.f32 %v2668_v16, %v2711_v0 }
 0x1b1   :  { %v550_v22 = vadd.f32 %v2258_v15, %v490_v20  ;;  %v482_v23 = vadd.f32 %v481_v21, %v432_v1  ;;  %v390_v1 = vmax.f32 %v382_v56, 0.0 }
 0x1b2   :  { %v2253_v27 = vpop.f32.mrf.mxu1 }
 0x1b3   :  { %v548_v28 = vadd.f32 %v533_v17, %v482_v23  ;;  %v493_v29 = vadd.f32 %v2253_v27, %v2247_v2  ;;  %v554_v31 = vadd.f32 %v550_v22, %v2623_v35  ;;  %v385_v2 = vadd.f32 %v2241_v14, %v2704_v54 }
 0x1b4   :  { %v484_v30 = vpop.f32.mrf.mxu1  ;;  %v388_v17 = vmax.f32 %v374_v57, 0.0 }
 0x1b5   :  { %v551_v32 = vadd.f32 %v2259_v25, %v493_v29  ;;  %v485_v33 = vadd.f32 %v484_v30, %v435_v11  ;;  %v552_v36 = vadd.f32 %v548_v28, %v2625_v37  ;;  %v558_v40 = vmax.f32 %v554_v31, 0.0 }
 0x1b6   :  { %v391_v25 = vmax.f32 %v385_v2, 0.0  ;;  %v389_v31 = vmax.f32 %v377_v3, 0.0 }
 0x1b7   :  { %v555_v38 = vadd.f32 %v551_v32, %v2628_v48  ;;  %v549_v39 = vadd.f32 %v536_v34, %v485_v33  ;;  %v556_v43 = vmax.f32 %v552_v36, 0.0 }
 0x1b9   :  { %v559_v41 = vmax.f32 %v555_v38, 0.0  ;;  %v553_v42 = vadd.f32 %v549_v39, %v2632_v53 }
 0x1bb   :  { %v557_v44 = vmax.f32 %v553_v42, 0.0  ;;  %v561_v45 = vpack.c.bf16 %v559_v41, %v558_v40 }
 0x1bd   :  { %2260 = vmatprep.subr.bf16.mxu1 %v561_v45  ;;  %v560_v46 = vpack.c.bf16 %v557_v44, %v556_v43 }
 0x1be   :  { %2261 = vmatpush3.bf16.msra.mxu1 %v561_v45 }
 0x1bf   :  { %2262 = vmatprep.subr.bf16.mxu1 %v560_v46 }
 0x1c2   :  { %2263 = vmatpush3.bf16.msra.mxu1 %v560_v46 }
 0x1c3   :  { %2274 = vmatprep.subr.bf16.mxu1 %v2609_v26 }
 0x1c5   :  { %2265 = vmatmul.mubr.msk.bf16.vlgmr.msra.gmra.mxu1 %vm332_vm3, %v2638_v61 }
 0x1c6   :  { %2275 = vmatpush3.bf16.msra.mxu1 %v2609_v26  ;;  %2276 = vmatprep.mubr.msk.bf16.mxu1 %vm69_vm2, %v2514_v6  ;;  %v2272_v26 = vpop.f32.mrf.mxu0 }
 0x1c8   :  { %v655_v50 = vpop.f32.mrf.mxu0 }
 0x1ca   :  { %v2273_v52 = vpop.f32.mrf.mxu0 }
 0x1cc   :  { %v658_v59 = vpop.f32.mrf.mxu0 }
 0x1cd   :  { %2277 = vmatmul.mubr.msk.bf16.vlgmr.msra.gmra.mxu1 %vm69_vm2, %v2536_v10 }
 0x1ce   :  { %2290 = vmatprep.mubr.msk.bf16.mxu1 %vm332_vm3, %v2601_v24  ;;  %v2284_v20 = vpop.f32.mrf.mxu0 }
 0x1d0   :  { %v756_v29 = vpop.f32.mrf.mxu0 }
 0x1d2   :  { %v2285_v40 = vpop.f32.mrf.mxu0 }
 0x1d4   :  { %v759_v56 = vpop.f32.mrf.mxu0 }
 0x285   :  { %v2266_v58 = vpop.f32.mrf.mxu1 }
 0x286   :  { %v605_v60 = vadd.f32 %v2266_v58, %v2702_v51 }
 0x287   :  { %v596_v62 = vpop.f32.mrf.mxu1 }
 0x288   :  { %v613_v11 = vmax.f32 %v605_v60, 0.0  ;;  %v597_v15 = vadd.f32 %v596_v62, %v2706_v55 }
 0x289   :  { %v2267_v18 = vpop.f32.mrf.mxu1 }
 0x28a   :  { %v2717_v12 = vadd.f32 %v613_v11, %v390_v1  ;;  %v611_v21 = vmax.f32 %v597_v15, 0.0  ;;  %v608_v22 = vadd.f32 %v2267_v18, %v2704_v54 }
 0x28b   :  { %v599_v23 = vpop.f32.mrf.mxu1 }
 0x28c   :  { %v2720_v27 = vadd.f32 %v611_v21, %v388_v17  ;;  %v614_v28 = vmax.f32 %v608_v22, 0.0  ;;  %v600_v14 = vadd.f32 %v599_v23, %v2711_v0 }
 0x28d   :  { %v2278_v30 = vpop.f32.mrf.mxu1 }
 0x28e   :  { %v2723_v32 = vadd.f32 %v614_v28, %v391_v25  ;;  %v612_v33 = vmax.f32 %v600_v14, 0.0  ;;  %v713_v34 = vadd.f32 %v2278_v30, %v2272_v26 }
 0x28f   :  { %v704_v16 = vpop.f32.mrf.mxu1 }
 0x290   :  { %v2725_v36 = vadd.f32 %v612_v33, %v389_v31  ;;  %v773_v38 = vadd.f32 %v2284_v20, %v713_v34  ;;  %v705_v39 = vadd.f32 %v704_v16, %v655_v50 }
 0x291   :  { %v2279_v41 = vpop.f32.mrf.mxu1 }
 0x292   :  { %v771_v42 = vadd.f32 %v756_v29, %v705_v39  ;;  %v716_v43 = vadd.f32 %v2279_v41, %v2273_v52  ;;  %v777_v45 = vadd.f32 %v773_v38, %v2623_v35 }
 0x293   :  { %v707_v44 = vpop.f32.mrf.mxu1 }
 0x294   :  { %v774_v46 = vadd.f32 %v2285_v40, %v716_v43  ;;  %v708_v47 = vadd.f32 %v707_v44, %v658_v59  ;;  %v775_v57 = vadd.f32 %v771_v42, %v2625_v37  ;;  %v781_v60 = vmax.f32 %v777_v45, 0.0  ;;  %v2072_v59 = vld [vmem:[%s2902_s0 + $0xa] sm:$0x3] }
 0x295   :  { %v2745_v15 = vand.u32 %v2072_v59, %v2509_v5 }
 0x296   :  { %v778_v58 = vadd.f32 %v774_v46, %v2628_v48  ;;  %v772_v26 = vadd.f32 %v759_v56, %v708_v47  ;;  %v779_v50 = vmax.f32 %v775_v57, 0.0 }
 0x297   :  { %2332 = vmatprep.subr.bf16.mxu0 %v2745_v15 }
 0x298   :  { %v782_v62 = vmax.f32 %v778_v58, 0.0  ;;  %v776_v1 = vadd.f32 %v772_v26, %v2632_v53  ;;  %2333 = vmatpush3.bf16.msra.mxu0 %v2745_v15 }
 0x299   :  { %2346 = vmatprep.subr.bf16.mxu0 %v2688_v49 }
 0x29a   :  { %v780_v2 = vmax.f32 %v776_v1, 0.0  ;;  %v784_v11 = vpack.c.bf16 %v782_v62, %v781_v60 }
 0x29b   :  { %2335 = vmatmul.mubr.msk.bf16.vlgmr.msra.gmra.mxu0 %vm69_vm2, %v2575_v19 }
 0x29c   :  { %2286 = vmatprep.subr.bf16.mxu1 %v784_v11  ;;  %v783_v52 = vpack.c.bf16 %v780_v2, %v779_v50  ;;  %2347 = vmatpush3.bf16.msra.mxu0 %v2688_v49 }
 0x29d   :  { %2287 = vmatpush3.bf16.msra.mxu1 %v784_v11  ;;  %2348 = vmatprep.mubr.msk.bf16.mxu0 %vm69_vm2, %v2507_v4 }
 0x29e   :  { %2288 = vmatprep.subr.bf16.mxu1 %v783_v52 }
 0x2a1   :  { %2289 = vmatpush3.bf16.msra.mxu1 %v783_v52 }
 0x2a2   :  { %2300 = vmatprep.subr.bf16.mxu1 %v2654_v63 }
 0x2a3   :  { %2349 = vmatmul.mubr.msk.bf16.vlgmr.msra.gmra.mxu0 %vm69_vm2, %v2529_v9 }
 0x2a4   :  { %2291 = vmatmul.mubr.msk.bf16.vlgmr.msra.gmra.mxu1 %vm332_vm3, %v2638_v61  ;;  %2360 = vmatprep.mubr.msk.bf16.mxu0 %vm69_vm2, %v2549_v13 }
 0x2a5   :  { %2301 = vmatpush3.bf16.msra.mxu1 %v2654_v63  ;;  %2302 = vmatprep.mubr.msk.bf16.mxu1 %vm69_vm2, %v2514_v6  ;;  %v2298_v63 = vpop.f32.mrf.mxu0 }
 0x2a7   :  { %v878_v17 = vpop.f32.mrf.mxu0 }
 0x2a9   :  { %v2299_v18 = vpop.f32.mrf.mxu0 }
 0x2ab   :  { %v881_v3 = vpop.f32.mrf.mxu0 }
 0x2ac   :  { %2303 = vmatmul.mubr.msk.bf16.vlgmr.msra.gmra.mxu1 %vm69_vm2, %v2536_v10 }
 0x2ad   :  { %2316 = vmatprep.mubr.msk.bf16.mxu1 %vm332_vm3, %v2601_v24  ;;  %v2310_v14 = vpop.f32.mrf.mxu0 }
 0x2af   :  { %v979_v39 = vpop.f32.mrf.mxu0 }
 0x2b1   :  { %v2311_v47 = vpop.f32.mrf.mxu0 }
 0x2b3   :  { %v982_v1 = vpop.f32.mrf.mxu0 }
 0x364   :  { %v2292_v20 = vpop.f32.mrf.mxu1 }
 0x365   :  { %v828_v21 = vadd.f32 %v2292_v20, %v2702_v51  ;;  %v2081_v20 = vld [vmem:[%s2902_s0 + $0xc] sm:$0x3] }
 0x366   :  { %v819_v22 = vpop.f32.mrf.mxu1 }
 0x367   :  { %v836_v23 = vmax.f32 %v828_v21, 0.0  ;;  %v820_v25 = vadd.f32 %v819_v22, %v2706_v55 }
 0x368   :  { %v2293_v28 = vpop.f32.mrf.mxu1 }
 0x369   :  { %v2762_v29 = vadd.f32 %v836_v23, %v2717_v12  ;;  %v834_v30 = vmax.f32 %v820_v25, 0.0  ;;  %v831_v31 = vadd.f32 %v2293_v28, %v2704_v54 }
 0x36a   :  { %v822_v33 = vpop.f32.mrf.mxu1 }
 0x36b   :  { %v2766_v34 = vadd.f32 %v834_v30, %v2720_v27  ;;  %v837_v16 = vmax.f32 %v831_v31, 0.0  ;;  %v823_v38 = vadd.f32 %v822_v33, %v2711_v0 }
 0x36c   :  { %v2304_v40 = vpop.f32.mrf.mxu1 }
 0x36d   :  { %v2770_v41 = vadd.f32 %v837_v16, %v2723_v32  ;;  %v835_v42 = vmax.f32 %v823_v38, 0.0  ;;  %v936_v43 = vadd.f32 %v2304_v40, %v2298_v63 }
 0x36e   :  { %v927_v44 = vpop.f32.mrf.mxu1 }
 0x36f   :  { %v2773_v12 = vadd.f32 %v835_v42, %v2725_v36  ;;  %v996_v45 = vadd.f32 %v2310_v14, %v936_v43  ;;  %v928_v46 = vadd.f32 %v927_v44, %v878_v17 }
 0x370   :  { %v2305_v56 = vpop.f32.mrf.mxu1 }
 0x371   :  { %v994_v27 = vadd.f32 %v979_v39, %v928_v46  ;;  %v939_v57 = vadd.f32 %v2305_v56, %v2299_v18  ;;  %v1000_v26 = vadd.f32 %v996_v45, %v2623_v35 }
 0x372   :  { %v930_v58 = vpop.f32.mrf.mxu1 }
 0x373   :  { %v997_v60 = vadd.f32 %v2311_v47, %v939_v57  ;;  %v931_v62 = vadd.f32 %v930_v58, %v881_v3  ;;  %v998_v32 = vadd.f32 %v994_v27, %v2625_v37  ;;  %v1004_v11 = vmax.f32 %v1000_v26, 0.0 }
 0x374   :  { %v2793_v3 = vand.u32 %v2081_v20, %v2509_v5  ;;  %v2324_v5 = vpop.f32.mrf.mxu0 }
 0x375   :  { %v1001_v50 = vadd.f32 %v997_v60, %v2628_v48  ;;  %v995_v2 = vadd.f32 %v982_v1, %v931_v62  ;;  %v1002_v59 = vmax.f32 %v998_v32, 0.0 }
 0x376   :  { %2358 = vmatprep.subr.bf16.mxu0 %v2793_v3 }
 0x377   :  { %v1005_v36 = vmax.f32 %v1001_v50, 0.0  ;;  %v999_v52 = vadd.f32 %v995_v2, %v2632_v53  ;;  %2359 = vmatpush3.bf16.msra.mxu0 %v2793_v3 }
 0x378   :  { %2372 = vmatprep.subr.bf16.mxu0 %v2745_v15 }
 0x379   :  { %v1003_v63 = vmax.f32 %v999_v52, 0.0  ;;  %v1007_v17 = vpack.c.bf16 %v1005_v36, %v1004_v11 }
 0x37a   :  { %2361 = vmatmul.mubr.msk.bf16.vlgmr.msra.gmra.mxu0 %vm69_vm2, %v2575_v19 }
 0x37b   :  { %2312 = vmatprep.subr.bf16.mxu1 %v1007_v17  ;;  %v1006_v18 = vpack.c.bf16 %v1003_v63, %v1002_v59  ;;  %2373 = vmatpush3.bf16.msra.mxu0 %v2745_v15 }
 0x37c   :  { %2313 = vmatpush3.bf16.msra.mxu1 %v1007_v17  ;;  %2374 = vmatprep.mubr.msk.bf16.mxu0 %vm69_vm2, %v2507_v4 }
 0x37d   :  { %2314 = vmatprep.subr.bf16.mxu1 %v1006_v18  ;;  %2384 = vmatprep.subr.bf16.mxu0 %v2517_v7 }
 0x380   :  { %2315 = vmatpush3.bf16.msra.mxu1 %v1006_v18 }
 0x381   :  { %2326 = vmatprep.subr.bf16.mxu1 %v2688_v49 }
 0x382   :  { %2375 = vmatmul.mubr.msk.bf16.vlgmr.msra.gmra.mxu0 %vm69_vm2, %v2529_v9 }
 0x383   :  { %2317 = vmatmul.mubr.msk.bf16.vlgmr.msra.gmra.mxu1 %vm332_vm3, %v2638_v61  ;;  %2385 = vmatpush3.bf16.msra.mxu0 %v2517_v7 }
 0x384   :  { %2327 = vmatpush3.bf16.msra.mxu1 %v2688_v49  ;;  %2328 = vmatprep.mubr.msk.bf16.mxu1 %vm69_vm2, %v2514_v6  ;;  %v1101_v49 = vpop.f32.mrf.mxu0 }
 0x385   :  { %2386 = vmatprep.mubr.msk.bf16.mxu0 %vm69_vm2, %v2549_v13  ;;  %2398 = vmatprep.subr.bf16.mxu0 %v2793_v3 }
 0x386   :  { %v2325_v21 = vpop.f32.mrf.mxu0 }
 0x388   :  { %v1104_v23 = vpop.f32.mrf.mxu0 }
 0x38a   :  { %2387 = vmatmul.mubr.msk.bf16.vlgmr.msra.gmra.mxu0 %vm69_vm2, %v2575_v19  ;;  %v2336_v30 = vpop.f32.mrf.mxu0 }
 0x38b   :  { %2329 = vmatmul.mubr.msk.bf16.vlgmr.msra.gmra.mxu1 %vm69_vm2, %v2536_v10  ;;  %2399 = vmatpush3.bf16.msra.mxu0 %v2793_v3 }
 0x38c   :  { %2342 = vmatprep.mubr.msk.bf16.mxu1 %vm332_vm3, %v2601_v24  ;;  %2400 = vmatprep.mubr.msk.bf16.mxu0 %vm69_vm2, %v2507_v4  ;;  %v1202_v39 = vpop.f32.mrf.mxu0 }
 0x38d   :  { %2410 = vmatprep.subr.bf16.mxu0 %v2520_v8 }
 0x38e   :  { %v2337_v56 = vpop.f32.mrf.mxu0 }
 0x390   :  { %v1205_v1 = vpop.f32.mrf.mxu0 }
 0x392   :  { %2401 = vmatmul.mubr.msk.bf16.vlgmr.msra.gmra.mxu0 %vm69_vm2, %v2529_v9  ;;  %v2350_v17 = vpop.f32.mrf.mxu0 }
 0x393   :  { %2411 = vmatpush3.bf16.msra.mxu0 %v2520_v8  ;;  %2412 = vmatprep.mubr.msk.bf16.mxu0 %vm69_vm2, %v2549_v13 }
 0x394   :  { %v1324_v18 = vpop.f32.mrf.mxu0 }
 0x396   :  { %v2351_v20 = vpop.f32.mrf.mxu0 }
 0x39a   :  { %2413 = vmatmul.mubr.msk.bf16.vlgmr.msra.gmra.mxu0 %vm69_vm2, %v2575_v19 }
 0x443   :  { %v2318_v22 = vpop.f32.mrf.mxu1 }
 0x444   :  { %v1051_v4 = vadd.f32 %v2318_v22, %v2702_v51 }
 0x445   :  { %v1042_v25 = vpop.f32.mrf.mxu1 }
 0x446   :  { %v1059_v28 = vmax.f32 %v1051_v4, 0.0  ;;  %v1043_v14 = vadd.f32 %v1042_v25, %v2706_v55 }
 0x447   :  { %v2319_v9 = vpop.f32.mrf.mxu1 }
 0x448   :  { %v1063_v8 = vadd.f32 %v1059_v28, %v2762_v29  ;;  %v1057_v31 = vmax.f32 %v1043_v14, 0.0  ;;  %v1054_v13 = vadd.f32 %v2319_v9, %v2704_v54 }
 0x449   :  { %v1045_v33 = vpop.f32.mrf.mxu1 }
 0x44a   :  { %v1061_v19 = vadd.f32 %v1057_v31, %v2766_v34  ;;  %v1060_v16 = vmax.f32 %v1054_v13, 0.0  ;;  %v1046_v38 = vadd.f32 %v1045_v33, %v2711_v0 }
 0x44b   :  { %v2330_v40 = vpop.f32.mrf.mxu1 }
 0x44c   :  { %v1064_v42 = vadd.f32 %v1060_v16, %v2770_v41  ;;  %v1058_v43 = vmax.f32 %v1046_v38, 0.0  ;;  %v1159_v44 = vadd.f32 %v2330_v40, %v2324_v5 }
 0x44d   :  { %v1150_v45 = vpop.f32.mrf.mxu1 }
 0x44e   :  { %v1062_v46 = vadd.f32 %v1058_v43, %v2773_v12  ;;  %v1219_v47 = vadd.f32 %v2336_v30, %v1159_v44  ;;  %v1151_v29 = vadd.f32 %v1150_v45, %v1101_v49  ;;  %v1327_v49 = vpop.f32.mrf.mxu0 }
 0x44f   :  { %v2331_v27 = vpop.f32.mrf.mxu1 }
 0x450   :  { %v1217_v57 = vadd.f32 %v1202_v39, %v1151_v29  ;;  %v1162_v58 = vadd.f32 %v2331_v27, %v2325_v21  ;;  %v1223_v34 = vadd.f32 %v1219_v47, %v2623_v35  ;;  %v2362_v25 = vpop.f32.mrf.mxu0 }
 0x451   :  { %v1153_v26 = vpop.f32.mrf.mxu1 }
 0x452   :  { %v1220_v60 = vadd.f32 %v2337_v56, %v1162_v58  ;;  %v1154_v62 = vadd.f32 %v1153_v26, %v1104_v23  ;;  %v1221_v32 = vadd.f32 %v1217_v57, %v2625_v37  ;;  %v1227_v2 = vmax.f32 %v1223_v34, 0.0  ;;  %v1425_v16 = vpop.f32.mrf.mxu0 }
 0x454   :  { %v1224_v41 = vadd.f32 %v1220_v60, %v2628_v48  ;;  %v1218_v50 = vadd.f32 %v1205_v1, %v1154_v62  ;;  %v1225_v36 = vmax.f32 %v1221_v32, 0.0  ;;  %v2363_v56 = vpop.f32.mrf.mxu0 }
 0x456   :  { %v1228_v11 = vmax.f32 %v1224_v41, 0.0  ;;  %v1222_v12 = vadd.f32 %v1218_v50, %v2632_v53  ;;  %v1428_v60 = vpop.f32.mrf.mxu0 }
 0x458   :  { %v1226_v52 = vmax.f32 %v1222_v12, 0.0  ;;  %v1230_v59 = vpack.c.bf16 %v1228_v11, %v1227_v2 }
 0x45a   :  { %2338 = vmatprep.subr.bf16.mxu1 %v1230_v59  ;;  %v1229_v63 = vpack.c.bf16 %v1226_v52, %v1225_v36  ;;  %v2376_v36 = vpop.f32.mrf.mxu0 }
 0x45b   :  { %2339 = vmatpush3.bf16.msra.mxu1 %v1230_v59 }
 0x45c   :  { %2340 = vmatprep.subr.bf16.mxu1 %v1229_v63  ;;  %v1545_v52 = vpop.f32.mrf.mxu0 }
 0x45e   :  { %v2377_v59 = vpop.f32.mrf.mxu0 }
 0x45f   :  { %2341 = vmatpush3.bf16.msra.mxu1 %v1229_v63 }
 0x460   :  { %2352 = vmatprep.subr.bf16.mxu1 %v2745_v15 }
 0x462   :  { %2343 = vmatmul.mubr.msk.bf16.vlgmr.msra.gmra.mxu1 %vm332_vm3, %v2638_v61 }
 0x463   :  { %2353 = vmatpush3.bf16.msra.mxu1 %v2745_v15  ;;  %2354 = vmatprep.mubr.msk.bf16.mxu1 %vm69_vm2, %v2514_v6 }
 0x46a   :  { %2355 = vmatmul.mubr.msk.bf16.vlgmr.msra.gmra.mxu1 %vm69_vm2, %v2536_v10 }
 0x46b   :  { %2368 = vmatprep.mubr.msk.bf16.mxu1 %vm332_vm3, %v2601_v24 }
 0x522   :  { %v2344_v5 = vpop.f32.mrf.mxu1 }
 0x523   :  { %v1274_v21 = vadd.f32 %v2344_v5, %v2702_v51 }
 0x524   :  { %v1265_v22 = vpop.f32.mrf.mxu1 }
 0x525   :  { %v1282_v23 = vmax.f32 %v1274_v21, 0.0  ;;  %v1266_v15 = vadd.f32 %v1265_v22, %v2706_v55 }
 0x526   :  { %v2345_v4 = vpop.f32.mrf.mxu1 }
 0x527   :  { %v1286_v28 = vadd.f32 %v1282_v23, %v1063_v8  ;;  %v1280_v14 = vmax.f32 %v1266_v15, 0.0  ;;  %v1277_v9 = vadd.f32 %v2345_v4, %v2704_v54 }
 0x528   :  { %v1268_v30 = vpop.f32.mrf.mxu1 }
 0x529   :  { %v1284_v31 = vadd.f32 %v1280_v14, %v1061_v19  ;;  %v1283_v13 = vmax.f32 %v1277_v9, 0.0  ;;  %v1269_v33 = vadd.f32 %v1268_v30, %v2711_v0 }
 0x52a   :  { %v2356_v38 = vpop.f32.mrf.mxu1 }
 0x52b   :  { %v1287_v39 = vadd.f32 %v1283_v13, %v1064_v42  ;;  %v1281_v40 = vmax.f32 %v1269_v33, 0.0  ;;  %v1382_v43 = vadd.f32 %v2356_v38, %v2350_v17  ;;  %v1548_v17 = vpop.f32.mrf.mxu0 }
 0x52c   :  { %v1373_v44 = vpop.f32.mrf.mxu1 }
 0x52d   :  { %v1285_v45 = vadd.f32 %v1281_v40, %v1062_v46  ;;  %v1442_v47 = vadd.f32 %v2362_v25, %v1382_v43  ;;  %v1374_v29 = vadd.f32 %v1373_v44, %v1324_v18  ;;  %v2388_v21 = vpop.f32.mrf.mxu0 }
 0x52e   :  { %v2357_v27 = vpop.f32.mrf.mxu1 }
 0x52f   :  { %v1440_v8 = vadd.f32 %v1425_v16, %v1374_v29  ;;  %v1385_v57 = vadd.f32 %v2357_v27, %v2351_v20  ;;  %v1446_v26 = vadd.f32 %v1442_v47, %v2623_v35  ;;  %v1643_v30 = vpop.f32.mrf.mxu0 }
 0x530   :  { %v1376_v58 = vpop.f32.mrf.mxu1 }
 0x531   :  { %v1443_v19 = vadd.f32 %v2363_v56, %v1385_v57  ;;  %v1377_v34 = vadd.f32 %v1376_v58, %v1327_v49  ;;  %v1444_v62 = vadd.f32 %v1440_v8, %v2625_v37  ;;  %v1450_v32 = vmax.f32 %v1446_v26, 0.0  ;;  %v2389_v29 = vpop.f32.mrf.mxu0 }
 0x533   :  { %v1447_v42 = vadd.f32 %v1443_v19, %v2628_v48  ;;  %v1441_v1 = vadd.f32 %v1428_v60, %v1377_v34  ;;  %v1448_v50 = vmax.f32 %v1444_v62, 0.0  ;;  %v1646_v26 = vpop.f32.mrf.mxu0 }
 0x535   :  { %v1451_v41 = vmax.f32 %v1447_v42, 0.0  ;;  %v1445_v46 = vadd.f32 %v1441_v1, %v2632_v53 }
 0x537   :  { %v1449_v2 = vmax.f32 %v1445_v46, 0.0  ;;  %v1453_v11 = vpack.c.bf16 %v1451_v41, %v1450_v32  ;;  %v2402_v46 = vpop.f32.mrf.mxu0 }
 0x539   :  { %2364 = vmatprep.subr.bf16.mxu1 %v1453_v11  ;;  %v1452_v12 = vpack.c.bf16 %v1449_v2, %v1448_v50  ;;  %v1763_v50 = vpop.f32.mrf.mxu0 }
 0x53a   :  { %2365 = vmatpush3.bf16.msra.mxu1 %v1453_v11 }
 0x53b   :  { %2366 = vmatprep.subr.bf16.mxu1 %v1452_v12  ;;  %v2403_v2 = vpop.f32.mrf.mxu0 }
 0x53e   :  { %2367 = vmatpush3.bf16.msra.mxu1 %v1452_v12  ;;  %v1766_v12 = vpop.f32.mrf.mxu0 }
 0x53f   :  { %2378 = vmatprep.subr.bf16.mxu1 %v2793_v3 }
 0x541   :  { %2369 = vmatmul.mubr.msk.bf16.vlgmr.msra.gmra.mxu1 %vm332_vm3, %v2638_v61 }
 0x542   :  { %2379 = vmatpush3.bf16.msra.mxu1 %v2793_v3  ;;  %2380 = vmatprep.mubr.msk.bf16.mxu1 %vm69_vm2, %v2514_v6 }
 0x549   :  { %2381 = vmatmul.mubr.msk.bf16.vlgmr.msra.gmra.mxu1 %vm69_vm2, %v2536_v10 }
 0x54a   :  { %2394 = vmatprep.mubr.msk.bf16.mxu1 %vm332_vm3, %v2601_v24 }
 0x601   :  { %v2370_v63 = vpop.f32.mrf.mxu1 }
 0x602   :  { %v1497_v18 = vadd.f32 %v2370_v63, %v2702_v51 }
 0x603   :  { %v1488_v20 = vpop.f32.mrf.mxu1 }
 0x604   :  { %v1505_v5 = vmax.f32 %v1497_v18, 0.0  ;;  %v1489_v3 = vadd.f32 %v1488_v20, %v2706_v55 }
 0x605   :  { %v2371_v49 = vpop.f32.mrf.mxu1 }
 0x606   :  { %v1509_v22 = vadd.f32 %v1505_v5, %v1286_v28  ;;  %v1503_v23 = vmax.f32 %v1489_v3, 0.0  ;;  %v1500_v15 = vadd.f32 %v2371_v49, %v2704_v54 }
 0x607   :  { %v1491_v4 = vpop.f32.mrf.mxu1 }
 0x608   :  { %v1507_v25 = vadd.f32 %v1503_v23, %v1284_v31  ;;  %v1506_v14 = vmax.f32 %v1500_v15, 0.0  ;;  %v1492_v9 = vadd.f32 %v1491_v4, %v2711_v0 }
 0x609   :  { %v2382_v13 = vpop.f32.mrf.mxu1 }
 0x60a   :  { %v1510_v33 = vadd.f32 %v1506_v14, %v1287_v39  ;;  %v1504_v16 = vmax.f32 %v1492_v9, 0.0  ;;  %v1603_v38 = vadd.f32 %v2382_v13, %v2376_v36 }
 0x60b   :  { %v1594_v40 = vpop.f32.mrf.mxu1 }
 0x60c   :  { %v1508_v43 = vadd.f32 %v1504_v16, %v1285_v45  ;;  %v1660_v44 = vadd.f32 %v2388_v21, %v1603_v38  ;;  %v1595_v47 = vadd.f32 %v1594_v40, %v1545_v52 }
 0x60d   :  { %v2383_v56 = vpop.f32.mrf.mxu1 }
 0x60e   :  { %v1658_v28 = vadd.f32 %v1643_v30, %v1595_v47  ;;  %v1606_v27 = vadd.f32 %v2383_v56, %v2377_v59  ;;  %v1664_v57 = vadd.f32 %v1660_v44, %v2623_v35 }
 0x60f   :  { %v1597_v8 = vpop.f32.mrf.mxu1 }
 0x610   :  { %v1661_v31 = vadd.f32 %v2389_v29, %v1606_v27  ;;  %v1598_v58 = vadd.f32 %v1597_v8, %v1548_v17  ;;  %v1662_v19 = vadd.f32 %v1658_v28, %v2625_v37  ;;  %v1668_v60 = vmax.f32 %v1664_v57, 0.0  ;;  %v2414_v17 = vpop.f32.mrf.mxu0 }
 0x612   :  { %v1665_v39 = vadd.f32 %v1661_v31, %v2628_v48  ;;  %v1659_v34 = vadd.f32 %v1646_v26, %v1598_v58  ;;  %v1666_v42 = vmax.f32 %v1662_v19, 0.0  ;;  %v1861_v49 = vpop.f32.mrf.mxu0 }
 0x614   :  { %v1669_v62 = vmax.f32 %v1665_v39, 0.0  ;;  %v1663_v45 = vadd.f32 %v1659_v34, %v2632_v53  ;;  %v2415_v16 = vpop.f32.mrf.mxu0 }
 0x616   :  { %v1667_v1 = vmax.f32 %v1663_v45, 0.0  ;;  %v1671_v32 = vpack.c.bf16 %v1669_v62, %v1668_v60  ;;  %v1864_v56 = vpop.f32.mrf.mxu0 }
 0x618   :  { %2390 = vmatprep.subr.bf16.mxu1 %v1671_v32  ;;  %v1670_v41 = vpack.c.bf16 %v1667_v1, %v1666_v42 }
 0x619   :  { %2391 = vmatpush3.bf16.msra.mxu1 %v1671_v32 }
 0x61a   :  { %2392 = vmatprep.subr.bf16.mxu1 %v1670_v41 }
 0x61d   :  { %2393 = vmatpush3.bf16.msra.mxu1 %v1670_v41 }
 0x61e   :  { %2404 = vmatprep.subr.bf16.mxu1 %v2517_v7 }
 0x620   :  { %2395 = vmatmul.mubr.msk.bf16.vlgmr.msra.gmra.mxu1 %vm332_vm3, %v2638_v61 }
 0x621   :  { %2405 = vmatpush3.bf16.msra.mxu1 %v2517_v7  ;;  %2406 = vmatprep.mubr.msk.bf16.mxu1 %vm69_vm2, %v2514_v6 }
 0x628   :  { %2407 = vmatmul.mubr.msk.bf16.vlgmr.msra.gmra.mxu1 %vm69_vm2, %v2536_v10 }
 0x629   :  { %2420 = vmatprep.mubr.msk.bf16.mxu1 %vm332_vm3, %v2601_v24 }
 0x6e0   :  { %v2396_v11 = vpop.f32.mrf.mxu1 }
 0x6e1   :  { %v1715_v36 = vadd.f32 %v2396_v11, %v2702_v51 }
 0x6e2   :  { %v1706_v52 = vpop.f32.mrf.mxu1 }
 0x6e3   :  { %v1723_v59 = vmax.f32 %v1715_v36, 0.0  ;;  %v1707_v7 = vadd.f32 %v1706_v52, %v2706_v55 }
 0x6e4   :  { %v2397_v63 = vpop.f32.mrf.mxu1 }
 0x6e5   :  { %v1727_v6 = vadd.f32 %v1723_v59, %v1509_v22  ;;  %v1721_v18 = vmax.f32 %v1707_v7, 0.0  ;;  %v1718_v10 = vadd.f32 %v2397_v63, %v2704_v54 }
 0x6e6   :  { %v1709_v20 = vpop.f32.mrf.mxu1 }
 0x6e7   :  { %v1725_v5 = vadd.f32 %v1721_v18, %v1507_v25  ;;  %v1724_v24 = vmax.f32 %v1718_v10, 0.0  ;;  %v1710_v3 = vadd.f32 %v1709_v20, %v2711_v0 }
 0x6e8   :  { %v2408_v21 = vpop.f32.mrf.mxu1 }
 0x6e9   :  { %v1728_v23 = vadd.f32 %v1724_v24, %v1510_v33  ;;  %v1722_v15 = vmax.f32 %v1710_v3, 0.0  ;;  %v1821_v4 = vadd.f32 %v2408_v21, %v2402_v46 }
 0x6ea   :  { %v1812_v14 = vpop.f32.mrf.mxu1 }
 0x6eb   :  { %v1726_v9 = vadd.f32 %v1722_v15, %v1508_v43  ;;  %v1878_v30 = vadd.f32 %v2414_v17, %v1821_v4  ;;  %v1813_v13 = vadd.f32 %v1812_v14, %v1763_v50 }
 0x6ec   :  { %v2409_v38 = vpop.f32.mrf.mxu1 }
 0x6ed   :  { %v1876_v22 = vadd.f32 %v1861_v49, %v1813_v13  ;;  %v1824_v40 = vadd.f32 %v2409_v38, %v2403_v2  ;;  %v1882_v47 = vadd.f32 %v1878_v30, %v2623_v35  ;;  %v2451_v35 = vmov 0.0  }
 0x6ee   :  { %v1815_v44 = vpop.f32.mrf.mxu1  ;;  %2424 = vmatprep.subr.mxu0 %v2451_v35  ;;  %2432 = vmatprep.mubr.msk.f32.mxu0 %vm2452_vm4, %v2451_v35 }
 0x6ef   :  { %v1879_v25 = vadd.f32 %v2415_v16, %v1824_v40  ;;  %v1816_v29 = vadd.f32 %v1815_v44, %v1766_v12  ;;  %v1880_v28 = vadd.f32 %v1876_v22, %v2625_v37  ;;  %v1886_v8 = vmax.f32 %v1882_v47, 0.0 }
 0x6f1   :  { %v1883_v33 = vadd.f32 %v1879_v25, %v2628_v48  ;;  %v1877_v27 = vadd.f32 %v1864_v56, %v1816_v29  ;;  %v1884_v31 = vmax.f32 %v1880_v28, 0.0 }
 0x6f3   :  { %v1887_v57 = vmax.f32 %v1883_v33, 0.0  ;;  %v1881_v43 = vadd.f32 %v1877_v27, %v2632_v53 }
 0x6f5   :  { %v1885_v58 = vmax.f32 %v1881_v43, 0.0  ;;  %v1889_v26 = vpack.c.bf16 %v1887_v57, %v1886_v8 }
 0x6f7   :  { %2416 = vmatprep.subr.bf16.mxu1 %v1889_v26  ;;  %v1888_v19 = vpack.c.bf16 %v1885_v58, %v1884_v31 }
 0x6f8   :  { %2417 = vmatpush3.bf16.msra.mxu1 %v1889_v26 }
 0x6f9   :  { %2418 = vmatprep.subr.bf16.mxu1 %v1888_v19 }
 0x6fc   :  { %2419 = vmatpush3.bf16.msra.mxu1 %v1888_v19 }
 0x6ff   :  { %2421 = vmatmul.mubr.msk.bf16.vlgmr.msra.gmra.mxu1 %vm332_vm3, %v2638_v61 }
 0x7bf   :  { %v2422_v37 = vpop.f32.mrf.mxu1 }
 0x7c0   :  { %v1933_v39 = vadd.f32 %v2422_v37, %v2702_v51 }
 0x7c1   :  { %v1924_v48 = vpop.f32.mrf.mxu1 }
 0x7c2   :  { %v1941_v62 = vmax.f32 %v1933_v39, 0.0  ;;  %v1925_v45 = vadd.f32 %v1924_v48, %v2706_v55 }
 0x7c3   :  { %v2423_v53 = vpop.f32.mrf.mxu1 }
 0x7c4   :  { %v1936_v34 = vadd.f32 %v2423_v53, %v2704_v54  ;;  %v1945_v41 = vadd.f32 %v1941_v62, %v1727_v6  ;;  %v1939_v46 = vmax.f32 %v1925_v45, 0.0  ;;  %v1947_v54 = vld [vmem:[%s2909_s7] sm:$0x1] }
 0x7c5   :  { %v1927_v60 = vpop.f32.mrf.mxu1 }
 0x7c6   :  { %v1942_v42 = vmax.f32 %v1936_v34, 0.0  ;;  %v1928_v1 = vadd.f32 %v1927_v60, %v2711_v0  ;;  %v1943_v51 = vadd.f32 %v1939_v46, %v1725_v5 }
 0x7c8   :  { %v1946_v32 = vadd.f32 %v1942_v42, %v1728_v23  ;;  %v1940_v61 = vmax.f32 %v1928_v1, 0.0 }
 0x7ca   :  { %2425 = vmatpush3.msra.mxu0 %v1946_v32  ;;  %v1944_v50 = vadd.f32 %v1940_v61, %v1726_v9 }
 0x7cb   :  { %2426 = vmatprep.subr.mxu0 %v2451_v35 }
 0x7cc   :  { %2427 = vmatpush3.msra.mxu0 %v1945_v41 }
 0x7cd   :  { %2428 = vmatprep.subr.mxu0 %v2451_v35 }
 0x7ce   :  { %2429 = vmatpush3.msra.mxu0 %v1944_v50 }
 0x7cf   :  { %2430 = vmatprep.subr.mxu0 %v2451_v35 }
 0x7d0   :  { %2431 = vmatpush3.msra.mxu0 %v1943_v51 }
 0x7d1   :  { %2433 = vmatmul.mubr.msk.f32.vlgmr.msra.gmra.mxu0 %vm332_vm3, %v1947_v54 }
 0x891   :  { %v2017_v55 = vpop.f32.mrf.mxu0 }
 0x892   :  { %2022 = vst.msk [vmem:[%s2910_s8] sm:$0x1] %vm2021_vm5, %v2017_v55 }
 0x893   :  { %v2434_v0 = vpop.f32.mrf.mxu0 }

</bundles_post_ra>
